<compile_context>
chip_gen: v7x
topology: tpu7x:2x2x1
jax: 0.10.0
libtpu: 0.0.40
codegen_flags: <defaults>
</compile_context>

<pallas_src>
import jax
import jax.numpy as jnp
from jax.experimental import pallas as pl
from jax.experimental.pallas import tpu as pltpu

LN_EPS = 1e-5        # PyTorch nn.LayerNorm default
_LANE = 128
_ROW_ALIGN = 256     # full MXU M-cadence on v6e/v7x (also a multiple of 128 for v5e)


def _round_up(x, m):
    return (x + m - 1) // m * m


def _layernorm_relu(h, gamma, beta):
    # Two-pass layernorm (matches PyTorch exactly); rsqrt goes to the EUP.
    mu = jnp.mean(h, axis=-1, keepdims=True)
    c = h - mu
    var = jnp.mean(c * c, axis=-1, keepdims=True)
    y = c * jax.lax.rsqrt(var + LN_EPS) * gamma + beta
    return jnp.maximum(y, 0.0)
    # TODO(synk): if this ever becomes XLU-bound (compute-bound regime), move the
    # row reductions onto the (idle) MXU via a ones(H,1) matmul.


def antmlp_kernel(x_ref, w1_ref, w2_ref, wh_ref, pvec_ref, out_ref):
    H = w2_ref.shape[0]
    head_pad = wh_ref.shape[1]

    # One packed (8, P) f32 operand: rows = b1, g1, be1, b2, g2, be2, bh, 0.
    p = pvec_ref[...]
    b1, g1, be1 = p[0:1, :H], p[1:2, :H], p[2:3, :H]
    b2, g2, be2 = p[3:4, :H], p[4:5, :H], p[5:6, :H]
    bh = p[6:7, :head_pad]

    # fc1 (single fused-input dot), f32 accumulation, then ln1 + relu.
    h = jnp.dot(x_ref[...], w1_ref[...], preferred_element_type=jnp.float32) + b1
    h = _layernorm_relu(h, g1, be1)

    # fc2 -> ln2 -> relu
    h = jnp.dot(h.astype(w2_ref.dtype), w2_ref[...],
                preferred_element_type=jnp.float32) + b2
    h = _layernorm_relu(h, g2, be2)

    # Fused (action ++ message) head, padded to a 128-lane multiple -> one
    # lane-dense store (no masked vst.msk); split happens outside.
    out_ref[...] = (jnp.dot(h.astype(wh_ref.dtype), wh_ref[...],
                            preferred_element_type=jnp.float32)
                    + bh).astype(out_ref.dtype)


def prepare_params(params, matmul_dtype=jnp.bfloat16, out_dtype=None):
    """One-time packing of the AntMLP parameters into kernel-ready form."""
    H = params["w2"].shape[0]
    A = params["wa"].shape[1]
    M = params["wm"].shape[1]
    head_pad = _round_up(A + M, _LANE)
    P = max(H, head_pad)

    # Fused head weight, padded to a lane-dense width.
    wh = jnp.concatenate([params["wa"], params["wm"]], axis=1)
    wh = jnp.pad(wh, ((0, 0), (0, head_pad - (A + M))))

    def row(v):
        v = jnp.reshape(v, (1, -1)).astype(jnp.float32)
        return jnp.pad(v, ((0, 0), (0, P - v.shape[1])))

    bh = jnp.concatenate([params["ba"], params["bm"]], axis=1)
    pvec = jnp.concatenate([
        row(params["b1"]), row(params["g1"]), row(params["be1"]),
        row(params["b2"]), row(params["g2"]), row(params["be2"]),
        row(bh),
        jnp.zeros((1, P), jnp.float32),
    ], axis=0)  # (8, P) — a single sublane-aligned VMEM tile

    if out_dtype is None:
        out_dtype = matmul_dtype   # bf16 output halves padded-lane writeback

    return {
        # matmul operands (bf16 by default); elementwise math stays f32
        "w1": params["w1"].astype(matmul_dtype),
        "w2": params["w2"].astype(matmul_dtype),
        "wh": wh.astype(matmul_dtype),
        "pvec": pvec,
        "A": A, "M": M, "H": H, "head_pad": head_pad,
        "matmul_dtype": matmul_dtype, "out_dtype": out_dtype,
    }


def ant_mlp_forward(local_obs, command, kp, *, batch_tile=2048):
    B = local_obs.shape[0]
    din = local_obs.shape[1] + command.shape[1]
    H, head_pad = kp["H"], kp["head_pad"]
    dt, out_dtype = kp["matmul_dtype"], kp["out_dtype"]

    # Single fused (B, din) matmul input; the wrapper concat of a 32-wide
    # operand is free compared to two K=24 / K=8 MXU pushes.
    x = jnp.concatenate([local_obs, command], axis=-1).astype(dt)

    # Tile sizing: big tiles to amortize ~0.35us/step grid overhead, 256-row
    # MXU cadence, and >=2 grid steps whenever B permits (v7x has 2 TCs
    # sharded over the "parallel" batch axis).
    batch_tile = _round_up(max(batch_tile, _ROW_ALIGN), _ROW_ALIGN)
    pad_min = _round_up(B, _ROW_ALIGN)
    if B >= 2 * _ROW_ALIGN:
        tile = min(batch_tile, _round_up(pad_min // 2, _ROW_ALIGN))
    else:
        tile = min(batch_tile, pad_min)
    pad_b = _round_up(B, tile)
    nb = pad_b // tile
    if pad_b != B:
        x = jnp.pad(x, ((0, pad_b - B), (0, 0)))

    def const_spec(a):
        # Grid-invariant operand: constant index_map + single buffering
        # (double-buffering a constant block only wastes VMEM).
        nd = a.ndim
        return pl.BlockSpec(a.shape, lambda i, _n=nd: (0,) * _n,
                            pipeline_mode=pl.Buffered(1))

    in_specs = [
        pl.BlockSpec((tile, din), lambda i: (i, 0)),
        const_spec(kp["w1"]), const_spec(kp["w2"]),
        const_spec(kp["wh"]), const_spec(kp["pvec"]),
    ]
    out_spec = pl.BlockSpec((tile, head_pad), lambda i: (i, 0))

    itm = lambda d: jnp.dtype(d).itemsize
    param_bytes = sum(int(kp[k].size) * itm(kp[k].dtype)
                      for k in ("w1", "w2", "wh", "pvec"))

    # Advisory cost estimate for XLA's scheduler.
    bytes_accessed = int(x.size * itm(dt) + param_bytes
                         + pad_b * head_pad * itm(out_dtype))
    cost = pl.CostEstimate(
        flops=int(2 * pad_b * (din * H + H * H + H * head_pad)),
        transcendentals=int(2 * pad_b),
        bytes_accessed=bytes_accessed)

    # Explicit scoped-VMEM limit so large tiles don't trip the v7x 32 MiB
    # default (per-step IO is double-buffered; f32 temporaries dominate).
    io_bytes = 2 * tile * din * itm(dt) + 2 * tile * head_pad * itm(out_dtype)
    tmp_bytes = 6 * tile * H * 4
    vmem_limit = int(min(max(io_bytes + param_bytes + tmp_bytes + (8 << 20),
                             32 << 20), 48 << 20))

    out = pl.pallas_call(
        antmlp_kernel,
        out_shape=jax.ShapeDtypeStruct((pad_b, head_pad), out_dtype),
        grid_spec=pltpu.PrefetchScalarGridSpec(
            num_scalar_prefetch=0,
            grid=(nb,),
            in_specs=in_specs,
            out_specs=out_spec,
        ),
        compiler_params=pltpu.CompilerParams(
            dimension_semantics=("parallel",),
            vmem_limit_bytes=vmem_limit),
        cost_estimate=cost,
    )(x, kp["w1"], kp["w2"], kp["wh"], kp["pvec"])

    A, M = kp["A"], kp["M"]
    return out[:B, :A], out[:B, A:A + M]


def init_params(key, local_obs_dim, command_dim, mlp_hidden_dim,
                num_phys_action_logits, message_dim):
    """Deterministic init mirroring AntMLP.__init__ (synthetic, not a checkpoint)."""
    din = local_obs_dim + command_dim
    k1, k2, k3, k4 = jax.random.split(key, 4)

    def kaiming(k, fan_in, fan_out):
        std = jnp.sqrt(2.0) / jnp.sqrt(float(fan_in))
        return jax.random.normal(k, (fan_in, fan_out), jnp.float32) * std

    orth = lambda scale: jax.nn.initializers.orthogonal(scale=scale)

    return {
        "w1": kaiming(k1, din, mlp_hidden_dim),
        "b1": jnp.zeros((1, mlp_hidden_dim), jnp.float32),
        "g1": jnp.ones((1, mlp_hidden_dim), jnp.float32),
        "be1": jnp.zeros((1, mlp_hidden_dim), jnp.float32),
        "w2": kaiming(k2, mlp_hidden_dim, mlp_hidden_dim),
        "b2": jnp.zeros((1, mlp_hidden_dim), jnp.float32),
        "g2": jnp.ones((1, mlp_hidden_dim), jnp.float32),
        "be2": jnp.zeros((1, mlp_hidden_dim), jnp.float32),
        "wa": orth(0.01)(k3, (mlp_hidden_dim, num_phys_action_logits), jnp.float32),
        "ba": jnp.zeros((1, num_phys_action_logits), jnp.float32),
        "wm": orth(0.1)(k4, (mlp_hidden_dim, message_dim), jnp.float32),
        "bm": jnp.zeros((1, message_dim), jnp.float32),
    }


def ant_mlp_reference(local_obs, command, params, matmul_dtype=jnp.float32):
    """Pure-JAX reference (PyTorch-style two-pass layernorm)."""
    def ln(h, g, b):
        mu = jnp.mean(h, axis=-1, keepdims=True)
        var = jnp.mean((h - mu) ** 2, axis=-1, keepdims=True)
        return (h - mu) * jax.lax.rsqrt(var + LN_EPS) * g + b

    x = jnp.concatenate([local_obs, command], axis=-1)
    h = jnp.dot(x.astype(matmul_dtype), params["w1"].astype(matmul_dtype),
                preferred_element_type=jnp.float32) + params["b1"]
    h = jnp.maximum(ln(h, params["g1"], params["be1"]), 0.0)
    h = jnp.dot(h.astype(matmul_dtype), params["w2"].astype(matmul_dtype),
                preferred_element_type=jnp.float32) + params["b2"]
    h = jnp.maximum(ln(h, params["g2"], params["be2"]), 0.0)
    act = jnp.dot(h.astype(matmul_dtype), params["wa"].astype(matmul_dtype),
                  preferred_element_type=jnp.float32) + params["ba"]
    msg = jnp.dot(h.astype(matmul_dtype), params["wm"].astype(matmul_dtype),
                  preferred_element_type=jnp.float32) + params["bm"]
    return act, msg


if __name__ == "__main__":
    local_obs_dim, command_dim = 24, 8
    mlp_hidden_dim = 128
    num_phys_action_logits, message_dim = 16, 8
    batch = 64

    key = jax.random.PRNGKey(0)
    k_obs, k_cmd, k_par = jax.random.split(key, 3)
    local_obs = jax.random.normal(k_obs, (batch, local_obs_dim), jnp.float32)
    command = jax.random.normal(k_cmd, (batch, command_dim), jnp.float32)
    params = init_params(k_par, local_obs_dim, command_dim, mlp_hidden_dim,
                         num_phys_action_logits, message_dim)

    # --- f32 matmul/output path: strict parity with the fp32 reference.
    kp32 = prepare_params(params, matmul_dtype=jnp.float32, out_dtype=jnp.float32)
    act32, msg32 = ant_mlp_forward(local_obs, command, kp32)
    jax.block_until_ready((act32, msg32))
    ref_a, ref_m = ant_mlp_reference(local_obs, command, params)
    assert jnp.allclose(act32, ref_a, atol=1e-4, rtol=1e-4)
    assert jnp.allclose(msg32, ref_m, atol=1e-4, rtol=1e-4)

    # --- multi-grid-step path (>=2 tiles + batch padding) on f32 for parity.
    big_b = 640
    k_ob, k_cb = jax.random.split(jax.random.PRNGKey(1), 2)
    obs_b = jax.random.normal(k_ob, (big_b, local_obs_dim), jnp.float32)
    cmd_b = jax.random.normal(k_cb, (big_b, command_dim), jnp.float32)
    act_b, msg_b = ant_mlp_forward(obs_b, cmd_b, kp32)
    jax.block_until_ready((act_b, msg_b))
    ref_ab, ref_mb = ant_mlp_reference(obs_b, cmd_b, params)
    assert jnp.allclose(act_b, ref_ab, atol=1e-4, rtol=1e-4)
    assert jnp.allclose(msg_b, ref_mb, atol=1e-4, rtol=1e-4)

    # --- bf16 matmul + bf16 output path (performance default): checked against a
    # bf16-matched reference (same casts, f32 accumulation) with loose tolerance.
    kp16 = prepare_params(params, matmul_dtype=jnp.bfloat16)
    act16, msg16 = ant_mlp_forward(local_obs, command, kp16)
    jax.block_until_ready((act16, msg16))
    ref_a16, ref_m16 = ant_mlp_reference(local_obs, command, params,
                                         matmul_dtype=jnp.bfloat16)
    assert jnp.allclose(act16.astype(jnp.float32), ref_a16, atol=1e-2, rtol=5e-2)
    assert jnp.allclose(msg16.astype(jnp.float32), ref_m16, atol=1e-2, rtol=5e-2)

    print("KERNEL_OK")
</pallas_src>

<mosaic_0001>
module attributes {stable_mosaic.version = 11 : i64} {
  func.func @antmlp_kernel(%arg0: i32, %arg1: memref<256x32xf32, #tpu.memory_space<vmem>>, %arg2: memref<32x128xf32, #tpu.memory_space<vmem>>, %arg3: memref<128x128xf32, #tpu.memory_space<vmem>>, %arg4: memref<128x128xf32, #tpu.memory_space<vmem>>, %arg5: memref<8x128xf32, #tpu.memory_space<vmem>>, %arg6: memref<256x128xf32, #tpu.memory_space<vmem>>) attributes {dimension_semantics = [#tpu.dimension_semantics<parallel>], iteration_bounds = array<i64: 1>, scalar_prefetch = 0 : i64, scratch_operands = 0 : i64, tpu.core_type = #tpu.core_type<tc>, window_params = [{transform_indices = @transform_0, window_bounds = array<i64: 256, 32>}, {pipeline_mode = #tpu.pipeline_mode<synchronous>, transform_indices = @transform_1, window_bounds = array<i64: 32, 128>}, {pipeline_mode = #tpu.pipeline_mode<synchronous>, transform_indices = @transform_2, window_bounds = array<i64: 128, 128>}, {pipeline_mode = #tpu.pipeline_mode<synchronous>, transform_indices = @transform_3, window_bounds = array<i64: 128, 128>}, {pipeline_mode = #tpu.pipeline_mode<synchronous>, transform_indices = @transform_4, window_bounds = array<i64: 8, 128>}, {transform_indices = @transform_5, window_bounds = array<i64: 256, 128>}]} {
    %c0 = arith.constant 0 : index
    %c0_0 = arith.constant 0 : index
    %0 = vector.load %arg5[%c0, %c0_0] : memref<8x128xf32, #tpu.memory_space<vmem>>, vector<8x128xf32>
    %1 = vector.extract_strided_slice %0 {offsets = [0, 0], sizes = [1, 128], strides = [1, 1]} : vector<8x128xf32> to vector<1x128xf32>
    %2 = vector.extract_strided_slice %0 {offsets = [1, 0], sizes = [1, 128], strides = [1, 1]} : vector<8x128xf32> to vector<1x128xf32>
    %3 = vector.extract_strided_slice %0 {offsets = [2, 0], sizes = [1, 128], strides = [1, 1]} : vector<8x128xf32> to vector<1x128xf32>
    %4 = vector.extract_strided_slice %0 {offsets = [3, 0], sizes = [1, 128], strides = [1, 1]} : vector<8x128xf32> to vector<1x128xf32>
    %5 = vector.extract_strided_slice %0 {offsets = [4, 0], sizes = [1, 128], strides = [1, 1]} : vector<8x128xf32> to vector<1x128xf32>
    %6 = vector.extract_strided_slice %0 {offsets = [5, 0], sizes = [1, 128], strides = [1, 1]} : vector<8x128xf32> to vector<1x128xf32>
    %7 = vector.extract_strided_slice %0 {offsets = [6, 0], sizes = [1, 128], strides = [1, 1]} : vector<8x128xf32> to vector<1x128xf32>
    %c0_1 = arith.constant 0 : index
    %c0_2 = arith.constant 0 : index
    %8 = vector.load %arg1[%c0_1, %c0_2] : memref<256x32xf32, #tpu.memory_space<vmem>>, vector<256x32xf32>
    %c0_3 = arith.constant 0 : index
    %c0_4 = arith.constant 0 : index
    %9 = vector.load %arg2[%c0_3, %c0_4] : memref<32x128xf32, #tpu.memory_space<vmem>>, vector<32x128xf32>
    %cst = arith.constant dense<0.000000e+00> : vector<256x128xf32>
    %10 = tpu.matmul %8, %9, %cst {dimension_numbers = #tpu.dot_dimension_numbers<[1], [0], [0], [1], [0, 0, 1, 1], [], []>} : vector<256x32xf32>, vector<32x128xf32>, vector<256x128xf32> -> vector<256x128xf32>
    %11 = vector.broadcast %1 : vector<1x128xf32> to vector<256x128xf32>
    %12 = arith.addf %10, %11 : vector<256x128xf32>
    %cst_5 = arith.constant dense<0.000000e+00> : vector<256xf32>
    %13 = vector.multi_reduction <add>, %12, %cst_5 [1] : vector<256x128xf32> to vector<256xf32>
    %14 = vector.shape_cast %13 : vector<256xf32> to vector<256x1xf32>
    %cst_6 = arith.constant 1.280000e+02 : f32
    %15 = vector.broadcast %cst_6 : f32 to vector<256x1xf32>
    %16 = arith.divf %14, %15 : vector<256x1xf32>
    %17 = vector.broadcast %16 : vector<256x1xf32> to vector<256x128xf32>
    %18 = arith.subf %12, %17 : vector<256x128xf32>
    %19 = arith.mulf %18, %18 : vector<256x128xf32>
    %cst_7 = arith.constant dense<0.000000e+00> : vector<256xf32>
    %20 = vector.multi_reduction <add>, %19, %cst_7 [1] : vector<256x128xf32> to vector<256xf32>
    %21 = vector.shape_cast %20 : vector<256xf32> to vector<256x1xf32>
    %cst_8 = arith.constant 1.280000e+02 : f32
    %22 = vector.broadcast %cst_8 : f32 to vector<256x1xf32>
    %23 = arith.divf %21, %22 : vector<256x1xf32>
    %cst_9 = arith.constant 9.99999974E-6 : f32
    %24 = vector.broadcast %cst_9 : f32 to vector<256x1xf32>
    %25 = arith.addf %23, %24 : vector<256x1xf32>
    %26 = math.rsqrt %25 : vector<256x1xf32>
    %27 = vector.broadcast %26 : vector<256x1xf32> to vector<256x128xf32>
    %28 = arith.mulf %18, %27 : vector<256x128xf32>
    %29 = vector.broadcast %2 : vector<1x128xf32> to vector<256x128xf32>
    %30 = arith.mulf %28, %29 : vector<256x128xf32>
    %31 = vector.broadcast %3 : vector<1x128xf32> to vector<256x128xf32>
    %32 = arith.addf %30, %31 : vector<256x128xf32>
    %cst_10 = arith.constant 0.000000e+00 : f32
    %33 = vector.broadcast %cst_10 : f32 to vector<256x128xf32>
    %34 = arith.maximumf %32, %33 : vector<256x128xf32>
    %c0_11 = arith.constant 0 : index
    %c0_12 = arith.constant 0 : index
    %35 = vector.load %arg3[%c0_11, %c0_12] : memref<128x128xf32, #tpu.memory_space<vmem>>, vector<128x128xf32>
    %cst_13 = arith.constant dense<0.000000e+00> : vector<256x128xf32>
    %36 = tpu.matmul %34, %35, %cst_13 {dimension_numbers = #tpu.dot_dimension_numbers<[1], [0], [0], [1], [0, 0, 1, 1], [], []>} : vector<256x128xf32>, vector<128x128xf32>, vector<256x128xf32> -> vector<256x128xf32>
    %37 = vector.broadcast %4 : vector<1x128xf32> to vector<256x128xf32>
    %38 = arith.addf %36, %37 : vector<256x128xf32>
    %cst_14 = arith.constant dense<0.000000e+00> : vector<256xf32>
    %39 = vector.multi_reduction <add>, %38, %cst_14 [1] : vector<256x128xf32> to vector<256xf32>
    %40 = vector.shape_cast %39 : vector<256xf32> to vector<256x1xf32>
    %cst_15 = arith.constant 1.280000e+02 : f32
    %41 = vector.broadcast %cst_15 : f32 to vector<256x1xf32>
    %42 = arith.divf %40, %41 : vector<256x1xf32>
    %43 = vector.broadcast %42 : vector<256x1xf32> to vector<256x128xf32>
    %44 = arith.subf %38, %43 : vector<256x128xf32>
    %45 = arith.mulf %44, %44 : vector<256x128xf32>
    %cst_16 = arith.constant dense<0.000000e+00> : vector<256xf32>
    %46 = vector.multi_reduction <add>, %45, %cst_16 [1] : vector<256x128xf32> to vector<256xf32>
    %47 = vector.shape_cast %46 : vector<256xf32> to vector<256x1xf32>
    %cst_17 = arith.constant 1.280000e+02 : f32
    %48 = vector.broadcast %cst_17 : f32 to vector<256x1xf32>
    %49 = arith.divf %47, %48 : vector<256x1xf32>
    %cst_18 = arith.constant 9.99999974E-6 : f32
    %50 = vector.broadcast %cst_18 : f32 to vector<256x1xf32>
    %51 = arith.addf %49, %50 : vector<256x1xf32>
    %52 = math.rsqrt %51 : vector<256x1xf32>
    %53 = vector.broadcast %52 : vector<256x1xf32> to vector<256x128xf32>
    %54 = arith.mulf %44, %53 : vector<256x128xf32>
    %55 = vector.broadcast %5 : vector<1x128xf32> to vector<256x128xf32>
    %56 = arith.mulf %54, %55 : vector<256x128xf32>
    %57 = vector.broadcast %6 : vector<1x128xf32> to vector<256x128xf32>
    %58 = arith.addf %56, %57 : vector<256x128xf32>
    %cst_19 = arith.constant 0.000000e+00 : f32
    %59 = vector.broadcast %cst_19 : f32 to vector<256x128xf32>
    %60 = arith.maximumf %58, %59 : vector<256x128xf32>
    %c0_20 = arith.constant 0 : index
    %c0_21 = arith.constant 0 : index
    %61 = vector.load %arg4[%c0_20, %c0_21] : memref<128x128xf32, #tpu.memory_space<vmem>>, vector<128x128xf32>
    %cst_22 = arith.constant dense<0.000000e+00> : vector<256x128xf32>
    %62 = tpu.matmul %60, %61, %cst_22 {dimension_numbers = #tpu.dot_dimension_numbers<[1], [0], [0], [1], [0, 0, 1, 1], [], []>} : vector<256x128xf32>, vector<128x128xf32>, vector<256x128xf32> -> vector<256x128xf32>
    %63 = vector.broadcast %7 : vector<1x128xf32> to vector<256x128xf32>
    %64 = arith.addf %62, %63 : vector<256x128xf32>
    %c0_23 = arith.constant 0 : index
    %c0_24 = arith.constant 0 : index
    %65 = vector.load %arg6[%c0_23, %c0_24] : memref<256x128xf32, #tpu.memory_space<vmem>>, vector<256x128xf32>
    tpu.vector_store %arg6[%c0_23, %c0_24], %64 {strides = array<i32>} : memref<256x128xf32, #tpu.memory_space<vmem>>, vector<256x128xf32>,
    return
  }
  func.func @transform_0(%arg0: i32) -> (i32, i32) {
    %c0_i32 = arith.constant 0 : i32
    %c0_i32_0 = arith.constant 0 : i32
    return %arg0, %c0_i32 : i32, i32
  }
  func.func @transform_1(%arg0: i32) -> (i32, i32) {
    %c0_i32 = arith.constant 0 : i32
    %c0_i32_0 = arith.constant 0 : i32
    %c0_i32_1 = arith.constant 0 : i32
    return %c0_i32, %c0_i32_0 : i32, i32
  }
  func.func @transform_2(%arg0: i32) -> (i32, i32) {
    %c0_i32 = arith.constant 0 : i32
    %c0_i32_0 = arith.constant 0 : i32
    %c0_i32_1 = arith.constant 0 : i32
    return %c0_i32, %c0_i32_0 : i32, i32
  }
  func.func @transform_3(%arg0: i32) -> (i32, i32) {
    %c0_i32 = arith.constant 0 : i32
    %c0_i32_0 = arith.constant 0 : i32
    %c0_i32_1 = arith.constant 0 : i32
    return %c0_i32, %c0_i32_0 : i32, i32
  }
  func.func @transform_4(%arg0: i32) -> (i32, i32) {
    %c0_i32 = arith.constant 0 : i32
    %c0_i32_0 = arith.constant 0 : i32
    %c0_i32_1 = arith.constant 0 : i32
    return %c0_i32, %c0_i32_0 : i32, i32
  }
  func.func @transform_5(%arg0: i32) -> (i32, i32) {
    %c0_i32 = arith.constant 0 : i32
    %c0_i32_0 = arith.constant 0 : i32
    return %arg0, %c0_i32 : i32, i32
  }
}

</mosaic_0001>

<bundles_post_ra>
// kernel: tpu_custom_call.1
= control target key start
LH: loop header
LB: loop body
LE: loop exit
PB: predicated region body
PF: predicated region fallthrough
CT: control target
= control target key end

     0   :  { %vm62_vm0 = vcmask 261120   ;;  %s3577_s0 = inlined_call_operand.vmem [shape: f32[256,32], index: 0, kind: input, shape index: {}]   ;;  %s3578_s1 = inlined_call_operand.vmem [shape: f32[32,128], index: 1, kind: input, shape index: {}]   ;;  %s3579_s2 = inlined_call_operand.vmem [shape: f32[128,128], index: 2, kind: input, shape index: {}]   ;;  %s3580_s3 = inlined_call_operand.vmem [shape: f32[128,128], index: 3, kind: input, shape index: {}]   ;;  %s3581_s4 = inlined_call_operand.vmem [shape: f32[8,128], index: 4, kind: input, shape index: {}]   ;;  %s3582_s5 = inlined_call_operand.hbm [shape: f32[256,128], index: 5, kind: output, shape index: {}]  }
   0x1   :  { %v54_v0 = vld [vmem:[%s3578_s1] sm:$0xff]  ;;  %v55_v1 = vld [vmem:[%s3578_s1 + $0x8] sm:$0xff]  ;;  %v56_v2 = vld [vmem:[%s3578_s1 + $0x10] sm:$0xff] }
   0x2   :  { %v2215_v3 = vpack.c.bf16 %v55_v1, %v54_v0  ;;  %v57_v4 = vld [vmem:[%s3578_s1 + $0x18] sm:$0xff]  ;;  %v22_v5 = vld [vmem:[%s3577_s0] sm:$0xff]  ;;  %v23_v8 = vld [vmem:[%s3577_s0 + $0x8] sm:$0xff] }
   0x3   :  { %v2219_v6 = vpack.c.bf16 %v57_v4, %v56_v2  ;;  %2007 = vmatprep.mubr.msk.f32.mxu0 %vm62_vm0, %v22_v5  ;;  %v38_v7 = vld [vmem:[%s3577_s0 + $0x80] sm:$0xff]  ;;  %v39_v9 = vld [vmem:[%s3577_s0 + $0x88] sm:$0xff]  ;;  %v24_v10 = vld [vmem:[%s3577_s0 + $0x10] sm:$0xff] }
   0x4   :  { %2216 = vmatprep.subr.bf16.mxu0 %v2215_v3  ;;  %2287 = vmatprep.subr.bf16.mxu1 %v2215_v3  ;;  %v40_v11 = vld [vmem:[%s3577_s0 + $0x90] sm:$0xff]  ;;  %v25_v12 = vld [vmem:[%s3577_s0 + $0x18] sm:$0xff] }
   0x5   :  { %2218 = vmatpush3.bf16.msra.mxu0 %v2215_v3  ;;  %2289 = vmatpush3.bf16.msra.mxu1 %v2215_v3  ;;  %v41_v13 = vld [vmem:[%s3577_s0 + $0x98] sm:$0xff] }
   0x6   :  { %2220 = vmatprep.subr.bf16.mxu0 %v2219_v6  ;;  %2288 = vmatprep.subr.bf16.mxu1 %v2219_v6 }
   0x7   :  { %2031 = vmatprep.mubr.msk.f32.mxu1 %vm62_vm0, %v38_v7 }
   0x9   :  { %2222 = vmatpush3.bf16.msra.mxu0 %v2219_v6  ;;  %2290 = vmatpush3.bf16.msra.mxu1 %v2219_v6 }
   0xc   :  { %2008 = vmatmul.mubr.msk.f32.vlgmr.msra.gmra.mrb[0].mxu0 %vm62_vm0, %v23_v8  ;;  %2032 = vmatmul.mubr.msk.f32.vlgmr.msra.gmra.mrb[0].mxu1 %vm62_vm0, %v39_v9 }
   0xd   :  { %2010 = vmatprep.mubr.msk.f32.mxu0 %vm62_vm0, %v24_v10  ;;  %2034 = vmatprep.mubr.msk.f32.mxu1 %vm62_vm0, %v40_v11 }
   0xe   :  { %10 = vsyncpa [#allocation3], 0  ;;  %v26_v14 = vld [vmem:[%s3577_s0 + $0x20] sm:$0xff]  ;;  %v27_v16 = vld [vmem:[%s3577_s0 + $0x28] sm:$0xff]  ;;  %v58_v38 = vlaneseq }
   0xf   :  { %v42_v15 = vld [vmem:[%s3577_s0 + $0xa0] sm:$0xff]  ;;  %v43_v17 = vld [vmem:[%s3577_s0 + $0xa8] sm:$0xff]  ;;  %v28_v18 = vld [vmem:[%s3577_s0 + $0x30] sm:$0xff] }
  0x10   :  { %2011 = vmatmul.mubr.msk.f32.gmra.mrb[2].mxu0 %vm62_vm0, %v25_v12  ;;  %2035 = vmatmul.mubr.msk.f32.gmra.mrb[2].mxu1 %vm62_vm0, %v41_v13  ;;  %v44_v19 = vld [vmem:[%s3577_s0 + $0xb0] sm:$0xff]  ;;  %v29_v20 = vld [vmem:[%s3577_s0 + $0x38] sm:$0xff]  ;;  %v30_v22 = vld [vmem:[%s3577_s0 + $0x40] sm:$0xff]  ;;  %v2621_v39 = vshrl.u32 %v58_v38, 7 }
  0x11   :  { %2013 = vmatprep.mubr.msk.f32.mxu0 %vm62_vm0, %v26_v14  ;;  %2037 = vmatprep.mubr.msk.f32.mxu1 %vm62_vm0, %v42_v15  ;;  %v45_v21 = vld [vmem:[%s3577_s0 + $0xb8] sm:$0xff]  ;;  %v46_v23 = vld [vmem:[%s3577_s0 + $0xc0] sm:$0xff]  ;;  %v31_v24 = vld [vmem:[%s3577_s0 + $0x48] sm:$0xff] }
  0x12   :  { %v47_v25 = vld [vmem:[%s3577_s0 + $0xc8] sm:$0xff]  ;;  %v32_v26 = vld [vmem:[%s3577_s0 + $0x50] sm:$0xff]  ;;  %v33_v28 = vld [vmem:[%s3577_s0 + $0x58] sm:$0xff]  ;;  %v60_v40 = vsub.s32 0, %v2621_v39 }
  0x13   :  { %v48_v27 = vld [vmem:[%s3577_s0 + $0xd0] sm:$0xff]  ;;  %v49_v29 = vld [vmem:[%s3577_s0 + $0xd8] sm:$0xff]  ;;  %v34_v30 = vld [vmem:[%s3577_s0 + $0x60] sm:$0xff] }
  0x14   :  { %2014 = vmatmul.mubr.msk.f32.gmra.mrb[4].mxu0 %vm62_vm0, %v27_v16  ;;  %2038 = vmatmul.mubr.msk.f32.gmra.mrb[4].mxu1 %vm62_vm0, %v43_v17  ;;  %v50_v31 = vld [vmem:[%s3577_s0 + $0xe0] sm:$0xff]  ;;  %v35_v32 = vld [vmem:[%s3577_s0 + $0x68] sm:$0xff]  ;;  %v36_v34 = vld [vmem:[%s3577_s0 + $0x70] sm:$0xff] }
  0x15   :  { %2016 = vmatprep.mubr.msk.f32.mxu0 %vm62_vm0, %v28_v18  ;;  %2040 = vmatprep.mubr.msk.f32.mxu1 %vm62_vm0, %v44_v19  ;;  %v51_v33 = vld [vmem:[%s3577_s0 + $0xe8] sm:$0xff]  ;;  %v52_v35 = vld [vmem:[%s3577_s0 + $0xf0] sm:$0xff]  ;;  %v37_v36 = vld [vmem:[%s3577_s0 + $0x78] sm:$0xff] }
  0x16   :  { %v53_v37 = vld [vmem:[%s3577_s0 + $0xf8] sm:$0xff]  ;;  %v2627_v41 = vld [vmem:[%s3581_s4] sm:$0xff] }
  0x17   :  { %v2630_v42 = vrot.slane %v2627_v41, %v60_v40 }
  0x18   :  { %2017 = vmatmul.mubr.msk.f32.gmra.mrb[6].mxu0 %vm62_vm0, %v29_v20  ;;  %2041 = vmatmul.mubr.msk.f32.gmra.mrb[6].mxu1 %vm62_vm0, %v45_v21 }
  0x19   :  { %2019 = vmatprep.mubr.msk.f32.mxu0 %vm62_vm0, %v30_v22  ;;  %2043 = vmatprep.mubr.msk.f32.mxu1 %vm62_vm0, %v46_v23 }
  0x1c   :  { %2020 = vmatmul.mubr.msk.f32.gmra.mrb[8].mxu0 %vm62_vm0, %v31_v24  ;;  %2044 = vmatmul.mubr.msk.f32.gmra.mrb[8].mxu1 %vm62_vm0, %v47_v25 }
  0x1d   :  { %2022 = vmatprep.mubr.msk.f32.mxu0 %vm62_vm0, %v32_v26  ;;  %2046 = vmatprep.mubr.msk.f32.mxu1 %vm62_vm0, %v48_v27 }
  0x20   :  { %2023 = vmatmul.mubr.msk.f32.gmra.mrb[10].mxu0 %vm62_vm0, %v33_v28  ;;  %2047 = vmatmul.mubr.msk.f32.gmra.mrb[10].mxu1 %vm62_vm0, %v49_v29 }
  0x21   :  { %2025 = vmatprep.mubr.msk.f32.mxu0 %vm62_vm0, %v34_v30  ;;  %2049 = vmatprep.mubr.msk.f32.mxu1 %vm62_vm0, %v50_v31 }
  0x24   :  { %2026 = vmatmul.mubr.msk.f32.gmra.mrb[12].mxu0 %vm62_vm0, %v35_v32  ;;  %2050 = vmatmul.mubr.msk.f32.gmra.mrb[12].mxu1 %vm62_vm0, %v51_v33 }
  0x25   :  { %2028 = vmatprep.mubr.msk.f32.mxu0 %vm62_vm0, %v36_v34  ;;  %2052 = vmatprep.mubr.msk.f32.mxu1 %vm62_vm0, %v52_v35 }
  0x28   :  { %2029 = vmatmul.mubr.msk.f32.gmra.mrb[14].mxu0 %vm62_vm0, %v37_v36  ;;  %2053 = vmatmul.mubr.msk.f32.gmra.mrb[14].mxu1 %vm62_vm0, %v53_v37 }
  0xdf   :  { %v2009_v43 = vpop.f32.mrb[0].mxu0  ;;  %v2632_v44 = vpop.f32.mrb[0].mxu1 }
  0xe0   :  { %v225_v45 = vpop.f32.mrb[1].mxu0  ;;  %v305_v46 = vpop.f32.mrb[1].mxu1  ;;  %v2641_v52 = vadd.f32 %v2009_v43, %v2630_v42  ;;  %v2712_v30 = vadd.f32 %v2632_v44, %v2630_v42 }
  0xe1   :  { %v2635_v47 = vadd.f32 %v225_v45, %v2630_v42  ;;  %v2700_v27 = vadd.f32 %v305_v46, %v2630_v42  ;;  %v841_v46 = vld [vmem:[%s3579_s2] sm:$0xff] }
  0xe3   :  { %v2012_v48 = vpop.f32.mrb[2].mxu0  ;;  %384 = vadd.xlane.f32.xlu0 %v2635_v47  ;;  %v2638_v49 = vpop.f32.mrb[2].mxu1 }
  0xe4   :  { %v235_v50 = vpop.f32.mrb[3].mxu0  ;;  %v315_v51 = vpop.f32.mrb[3].mxu1  ;;  %v2649_v58 = vadd.f32 %v2012_v48, %v2630_v42  ;;  %v2721_v32 = vadd.f32 %v2638_v49, %v2630_v42  ;;  %v842_v48 = vld [vmem:[%s3579_s2 + $0x8] sm:$0xff]  ;;  %v843_v49 = vld [vmem:[%s3579_s2 + $0x10] sm:$0xff] }
  0xe5   :  { %v2644_v53 = vadd.f32 %v235_v50, %v2630_v42  ;;  %v2708_v29 = vadd.f32 %v315_v51, %v2630_v42  ;;  %v844_v50 = vld [vmem:[%s3579_s2 + $0x18] sm:$0xff] }
  0xe6   :  { %v2227_v51 = vpack.c.bf16 %v844_v50, %v843_v49 }
  0xe7   :  { %v2015_v54 = vpop.f32.mrb[4].mxu0  ;;  %388 = vadd.xlane.f32.xlu1 %v2644_v53  ;;  %386 = vadd.xlane.f32.xlu0 %v2641_v52  ;;  %v2039_v55 = vpop.f32.mrb[4].mxu1 }
  0xe8   :  { %v245_v56 = vpop.f32.mrb[5].mxu0  ;;  %v325_v57 = vpop.f32.mrb[5].mxu1  ;;  %v2657_v0 = vadd.f32 %v2015_v54, %v2630_v42  ;;  %v2729_v34 = vadd.f32 %v2039_v55, %v2630_v42 }
  0xe9   :  { %v2652_v59 = vadd.f32 %v245_v56, %v2630_v42  ;;  %v2717_v31 = vadd.f32 %v325_v57, %v2630_v42 }
  0xeb   :  { %v2018_v60 = vpop.f32.mrb[6].mxu0  ;;  %390 = vadd.xlane.f32.xlu1 %v2649_v58  ;;  %392 = vadd.xlane.f32.xlu0 %v2652_v59  ;;  %v2042_v61 = vpop.f32.mrb[6].mxu1 }
  0xec   :  { %v255_v62 = vpop.f32.mrb[7].mxu0  ;;  %v335_v63 = vpop.f32.mrb[7].mxu1  ;;  %v2665_v6 = vadd.f32 %v2018_v60, %v2630_v42  ;;  %v2737_v36 = vadd.f32 %v2042_v61, %v2630_v42 }
  0xed   :  { %v2660_v1 = vadd.f32 %v255_v62, %v2630_v42  ;;  %v2726_v33 = vadd.f32 %v335_v63, %v2630_v42 }
  0xef   :  { %v2021_v2 = vpop.f32.mrb[8].mxu0  ;;  %394 = vadd.xlane.f32.xlu1 %v2657_v0  ;;  %396 = vadd.xlane.f32.xlu0 %v2660_v1  ;;  %v2045_v3 = vpop.f32.mrb[8].mxu1 }
  0xf0   :  { %v265_v4 = vpop.f32.mrb[9].mxu0  ;;  %v345_v5 = vpop.f32.mrb[9].mxu1  ;;  %v2673_v12 = vadd.f32 %v2021_v2, %v2630_v42  ;;  %v2745_v38 = vadd.f32 %v2045_v3, %v2630_v42 }
  0xf1   :  { %v2668_v7 = vadd.f32 %v265_v4, %v2630_v42  ;;  %v2734_v35 = vadd.f32 %v345_v5, %v2630_v42 }
  0xf3   :  { %v2024_v8 = vpop.f32.mrb[10].mxu0  ;;  %398 = vadd.xlane.f32.xlu1 %v2665_v6  ;;  %400 = vadd.xlane.f32.xlu0 %v2668_v7  ;;  %v2048_v9 = vpop.f32.mrb[10].mxu1 }
  0xf4   :  { %v275_v10 = vpop.f32.mrb[11].mxu0  ;;  %v355_v11 = vpop.f32.mrb[11].mxu1  ;;  %v2681_v18 = vadd.f32 %v2024_v8, %v2630_v42  ;;  %v2753_v43 = vadd.f32 %v2048_v9, %v2630_v42 }
  0xf5   :  { %v2676_v13 = vadd.f32 %v275_v10, %v2630_v42  ;;  %v2742_v37 = vadd.f32 %v355_v11, %v2630_v42 }
  0xf7   :  { %v2027_v14 = vpop.f32.mrb[12].mxu0  ;;  %402 = vadd.xlane.f32.xlu1 %v2673_v12  ;;  %404 = vadd.xlane.f32.xlu0 %v2676_v13  ;;  %v2051_v15 = vpop.f32.mrb[12].mxu1 }
  0xf8   :  { %v285_v16 = vpop.f32.mrb[13].mxu0  ;;  %v365_v17 = vpop.f32.mrb[13].mxu1  ;;  %v2692_v25 = vadd.f32 %v2027_v14, %v2630_v42  ;;  %v2761_v45 = vadd.f32 %v2051_v15, %v2630_v42 }
  0xf9   :  { %v2684_v19 = vadd.f32 %v285_v16, %v2630_v42  ;;  %v2750_v40 = vadd.f32 %v365_v17, %v2630_v42 }
  0xfb   :  { %v2030_v20 = vpop.f32.mrb[14].mxu0  ;;  %406 = vadd.xlane.f32.xlu1 %v2681_v18  ;;  %408 = vadd.xlane.f32.xlu0 %v2684_v19  ;;  %v2054_v21 = vpop.f32.mrb[14].mxu1 }
  0xfc   :  { %v295_v22 = vpop.f32.mrb[15].mxu0  ;;  %v2689_v23 = vadd.f32 %v2054_v21, %v2630_v42  ;;  %v375_v24 = vpop.f32.mrb[15].mxu1  ;;  %v2703_v28 = vadd.f32 %v2030_v20, %v2630_v42 }
  0xfd   :  { %v2695_v26 = vadd.f32 %v295_v22, %v2630_v42  ;;  %v2758_v44 = vadd.f32 %v375_v24, %v2630_v42  ;;  %v2223_v42 = vpack.c.bf16 %v842_v48, %v841_v46 }
  0xff   :  { %410 = vadd.xlane.f32.xlu1 %v2692_v25  ;;  %412 = vadd.xlane.f32.xlu0 %v2695_v26 }
 0x100   :  { %2224 = vmatprep.subr.bf16.mxu1 %v2223_v42 }
 0x101   :  { %2226 = vmatpush3.bf16.msra.mxu1 %v2223_v42 }
 0x102   :  { %2228 = vmatprep.subr.bf16.mxu1 %v2227_v51 }
 0x103   :  { %414 = vadd.xlane.f32.xlu1 %v2703_v28  ;;  %416 = vadd.xlane.f32.xlu0 %v2700_v27 }
 0x105   :  { %2230 = vmatpush3.bf16.msra.mxu1 %v2227_v51 }
 0x107   :  { %418 = vadd.xlane.f32.xlu1 %v2712_v30  ;;  %420 = vadd.xlane.f32.xlu0 %v2708_v29 }
 0x10b   :  { %422 = vadd.xlane.f32.xlu1 %v2721_v32  ;;  %424 = vadd.xlane.f32.xlu0 %v2717_v31 }
 0x10f   :  { %426 = vadd.xlane.f32.xlu1 %v2729_v34  ;;  %428 = vadd.xlane.f32.xlu0 %v2726_v33 }
 0x113   :  { %430 = vadd.xlane.f32.xlu1 %v2737_v36  ;;  %432 = vadd.xlane.f32.xlu0 %v2734_v35 }
 0x117   :  { %434 = vadd.xlane.f32.xlu1 %v2745_v38  ;;  %436 = vadd.xlane.f32.xlu0 %v2742_v37 }
 0x11b   :  { %438 = vadd.xlane.f32.xlu1 %v2753_v43  ;;  %440 = vadd.xlane.f32.xlu0 %v2750_v40 }
 0x11f   :  { %442 = vadd.xlane.f32.xlu1 %v2761_v45  ;;  %444 = vadd.xlane.f32.xlu0 %v2758_v44 }
 0x123   :  { %446 = vadd.xlane.f32.xlu1 %v2689_v23 }
 0x170   :  { %v385_v54 = vpop.xlane.xlu0 %384 }
 0x171   :  { %v449_v55 = vmul.f32 0.0078125, %v385_v54 }
 0x173   :  { %v2779_v56 = vsub.f32 %v2635_v47, %v449_v55 }
 0x174   :  { %v389_v57 = vpop.xlane.xlu1 %388  ;;  %v387_v60 = vpop.xlane.xlu0 %386 }
 0x175   :  { %v451_v61 = vmul.f32 0.0078125, %v389_v57  ;;  %v450_v62 = vmul.f32 0.0078125, %v387_v60  ;;  %v513_v63 = vmul.f32 %v2779_v56, %v2779_v56  ;;  %v845_v60 = vld [vmem:[%s3579_s2 + $0x20] sm:$0xff] }
 0x177   :  { %545 = vadd.xlane.f32.xlu0 %v513_v63  ;;  %v2784_v2 = vsub.f32 %v2644_v53, %v451_v61  ;;  %v2787_v3 = vsub.f32 %v2641_v52, %v450_v62 }
 0x178   :  { %v391_v4 = vpop.xlane.xlu1 %390  ;;  %v393_v5 = vpop.xlane.xlu0 %392 }
 0x179   :  { %v452_v8 = vmul.f32 0.0078125, %v391_v4  ;;  %v453_v9 = vmul.f32 0.0078125, %v393_v5  ;;  %v515_v47 = vmul.f32 %v2784_v2, %v2784_v2  ;;  %v514_v10 = vmul.f32 %v2787_v3, %v2787_v3 }
 0x17b   :  { %549 = vadd.xlane.f32.xlu0 %v515_v47  ;;  %547 = vadd.xlane.f32.xlu1 %v514_v10  ;;  %v2794_v11 = vsub.f32 %v2649_v58, %v452_v8  ;;  %v2797_v53 = vsub.f32 %v2652_v59, %v453_v9 }
 0x17c   :  { %v395_v52 = vpop.xlane.xlu1 %394  ;;  %v397_v14 = vpop.xlane.xlu0 %396 }
 0x17d   :  { %v454_v15 = vmul.f32 0.0078125, %v395_v52  ;;  %v455_v16 = vmul.f32 0.0078125, %v397_v14  ;;  %v516_v17 = vmul.f32 %v2794_v11, %v2794_v11  ;;  %v517_v20 = vmul.f32 %v2797_v53, %v2797_v53 }
 0x17f   :  { %551 = vadd.xlane.f32.xlu1 %v516_v17  ;;  %553 = vadd.xlane.f32.xlu0 %v517_v20  ;;  %v2804_v21 = vsub.f32 %v2657_v0, %v454_v15  ;;  %v2807_v58 = vsub.f32 %v2660_v1, %v455_v16 }
 0x180   :  { %v399_v59 = vpop.xlane.xlu1 %398  ;;  %v401_v22 = vpop.xlane.xlu0 %400 }
 0x181   :  { %v456_v24 = vmul.f32 0.0078125, %v399_v59  ;;  %v457_v46 = vmul.f32 0.0078125, %v401_v22  ;;  %v518_v48 = vmul.f32 %v2804_v21, %v2804_v21  ;;  %v519_v49 = vmul.f32 %v2807_v58, %v2807_v58 }
 0x183   :  { %555 = vadd.xlane.f32.xlu1 %v518_v48  ;;  %557 = vadd.xlane.f32.xlu0 %v519_v49  ;;  %v2814_v42 = vsub.f32 %v2665_v6, %v456_v24  ;;  %v2817_v0 = vsub.f32 %v2668_v7, %v457_v46  ;;  %v846_v6 = vld [vmem:[%s3579_s2 + $0x28] sm:$0xff] }
 0x184   :  { %v403_v1 = vpop.xlane.xlu1 %402  ;;  %v405_v50 = vpop.xlane.xlu0 %404  ;;  %v2231_v7 = vpack.c.bf16 %v846_v6, %v845_v60 }
 0x185   :  { %v458_v51 = vmul.f32 0.0078125, %v403_v1  ;;  %v459_v54 = vmul.f32 0.0078125, %v405_v50  ;;  %v520_v55 = vmul.f32 %v2814_v42, %v2814_v42  ;;  %v521_v57 = vmul.f32 %v2817_v0, %v2817_v0 }
 0x186   :  { %2232 = vmatprep.subr.bf16.mxu1 %v2231_v7 }
 0x187   :  { %559 = vadd.xlane.f32.xlu1 %v520_v55  ;;  %561 = vadd.xlane.f32.xlu0 %v521_v57  ;;  %v2830_v61 = vsub.f32 %v2673_v12, %v458_v51  ;;  %v2833_v62 = vsub.f32 %v2676_v13, %v459_v54  ;;  %v847_v12 = vld [vmem:[%s3579_s2 + $0x30] sm:$0xff]  ;;  %v848_v13 = vld [vmem:[%s3579_s2 + $0x38] sm:$0xff] }
 0x188   :  { %v407_v63 = vpop.xlane.xlu1 %406  ;;  %v409_v4 = vpop.xlane.xlu0 %408  ;;  %2234 = vmatpush3.bf16.msra.mxu1 %v2231_v7  ;;  %v2235_v14 = vpack.c.bf16 %v848_v13, %v847_v12 }
 0x189   :  { %v460_v5 = vmul.f32 0.0078125, %v407_v63  ;;  %v461_v8 = vmul.f32 0.0078125, %v409_v4  ;;  %v522_v9 = vmul.f32 %v2830_v61, %v2830_v61  ;;  %v523_v47 = vmul.f32 %v2833_v62, %v2833_v62 }
 0x18a   :  { %2236 = vmatprep.subr.bf16.mxu1 %v2235_v14 }
 0x18b   :  { %563 = vadd.xlane.f32.xlu1 %v522_v9  ;;  %565 = vadd.xlane.f32.xlu0 %v523_v47  ;;  %v2846_v10 = vsub.f32 %v2681_v18, %v460_v5  ;;  %v2849_v52 = vsub.f32 %v2684_v19, %v461_v8  ;;  %v849_v18 = vld [vmem:[%s3579_s2 + $0x40] sm:$0xff]  ;;  %v850_v19 = vld [vmem:[%s3579_s2 + $0x48] sm:$0xff] }
 0x18c   :  { %v411_v15 = vpop.xlane.xlu1 %410  ;;  %v413_v16 = vpop.xlane.xlu0 %412  ;;  %2238 = vmatpush3.bf16.msra.mxu1 %v2235_v14  ;;  %v2239_v48 = vpack.c.bf16 %v850_v19, %v849_v18 }
 0x18d   :  { %v462_v17 = vmul.f32 0.0078125, %v411_v15  ;;  %v463_v20 = vmul.f32 0.0078125, %v413_v16  ;;  %v524_v59 = vmul.f32 %v2846_v10, %v2846_v10  ;;  %v525_v22 = vmul.f32 %v2849_v52, %v2849_v52 }
 0x18e   :  { %2240 = vmatprep.subr.bf16.mxu1 %v2239_v48 }
 0x18f   :  { %567 = vadd.xlane.f32.xlu1 %v524_v59  ;;  %569 = vadd.xlane.f32.xlu0 %v525_v22  ;;  %v2862_v24 = vsub.f32 %v2692_v25, %v462_v17  ;;  %v2865_v46 = vsub.f32 %v2695_v26, %v463_v20  ;;  %v851_v25 = vld [vmem:[%s3579_s2 + $0x50] sm:$0xff]  ;;  %v852_v26 = vld [vmem:[%s3579_s2 + $0x58] sm:$0xff] }
 0x190   :  { %v415_v49 = vpop.xlane.xlu1 %414  ;;  %v417_v1 = vpop.xlane.xlu0 %416  ;;  %2242 = vmatpush3.bf16.msra.mxu1 %v2239_v48  ;;  %v2243_v6 = vpack.c.bf16 %v852_v26, %v851_v25 }
 0x191   :  { %v464_v50 = vmul.f32 0.0078125, %v415_v49  ;;  %v465_v51 = vmul.f32 0.0078125, %v417_v1  ;;  %v526_v54 = vmul.f32 %v2862_v24, %v2862_v24  ;;  %v527_v55 = vmul.f32 %v2865_v46, %v2865_v46 }
 0x192   :  { %2244 = vmatprep.subr.bf16.mxu1 %v2243_v6 }
 0x193   :  { %571 = vadd.xlane.f32.xlu1 %v526_v54  ;;  %573 = vadd.xlane.f32.xlu0 %v527_v55  ;;  %v2878_v57 = vsub.f32 %v2703_v28, %v464_v50  ;;  %v2881_v60 = vsub.f32 %v2700_v27, %v465_v51  ;;  %v853_v28 = vld [vmem:[%s3579_s2 + $0x60] sm:$0xff]  ;;  %v854_v27 = vld [vmem:[%s3579_s2 + $0x68] sm:$0xff] }
 0x194   :  { %v419_v7 = vpop.xlane.xlu1 %418  ;;  %v421_v63 = vpop.xlane.xlu0 %420  ;;  %2246 = vmatpush3.bf16.msra.mxu1 %v2243_v6  ;;  %v2247_v13 = vpack.c.bf16 %v854_v27, %v853_v28 }
 0x195   :  { %v466_v4 = vmul.f32 0.0078125, %v419_v7  ;;  %v467_v5 = vmul.f32 0.0078125, %v421_v63  ;;  %v528_v8 = vmul.f32 %v2878_v57, %v2878_v57  ;;  %v529_v9 = vmul.f32 %v2881_v60, %v2881_v60 }
 0x196   :  { %2248 = vmatprep.subr.bf16.mxu1 %v2247_v13 }
 0x197   :  { %575 = vadd.xlane.f32.xlu1 %v528_v8  ;;  %577 = vadd.xlane.f32.xlu0 %v529_v9  ;;  %v2894_v47 = vsub.f32 %v2712_v30, %v466_v4  ;;  %v2897_v12 = vsub.f32 %v2708_v29, %v467_v5  ;;  %v855_v30 = vld [vmem:[%s3579_s2 + $0x70] sm:$0xff]  ;;  %v856_v29 = vld [vmem:[%s3579_s2 + $0x78] sm:$0xff] }
 0x198   :  { %v423_v14 = vpop.xlane.xlu1 %422  ;;  %v425_v15 = vpop.xlane.xlu0 %424  ;;  %2250 = vmatpush3.bf16.msra.mxu1 %v2247_v13  ;;  %v2251_v19 = vpack.c.bf16 %v856_v29, %v855_v30 }
 0x199   :  { %v468_v16 = vmul.f32 0.0078125, %v423_v14  ;;  %v469_v17 = vmul.f32 0.0078125, %v425_v15  ;;  %v530_v20 = vmul.f32 %v2894_v47, %v2894_v47  ;;  %v531_v59 = vmul.f32 %v2897_v12, %v2897_v12 }
 0x19a   :  { %2252 = vmatprep.subr.bf16.mxu1 %v2251_v19 }
 0x19b   :  { %579 = vadd.xlane.f32.xlu1 %v530_v20  ;;  %581 = vadd.xlane.f32.xlu0 %v531_v59  ;;  %v2910_v22 = vsub.f32 %v2721_v32, %v468_v16  ;;  %v2913_v18 = vsub.f32 %v2717_v31, %v469_v17 }
 0x19c   :  { %v427_v48 = vpop.xlane.xlu1 %426  ;;  %v429_v49 = vpop.xlane.xlu0 %428  ;;  %2254 = vmatpush3.bf16.msra.mxu1 %v2251_v19 }
 0x19d   :  { %v470_v1 = vmul.f32 0.0078125, %v427_v48  ;;  %v471_v50 = vmul.f32 0.0078125, %v429_v49  ;;  %v532_v51 = vmul.f32 %v2910_v22, %v2910_v22  ;;  %v533_v54 = vmul.f32 %v2913_v18, %v2913_v18 }
 0x19f   :  { %583 = vadd.xlane.f32.xlu1 %v532_v51  ;;  %585 = vadd.xlane.f32.xlu0 %v533_v54  ;;  %v2920_v32 = vsub.f32 %v2729_v34, %v470_v1  ;;  %v2923_v31 = vsub.f32 %v2726_v33, %v471_v50 }
 0x1a0   :  { %v431_v55 = vpop.xlane.xlu1 %430  ;;  %v433_v25 = vpop.xlane.xlu0 %432 }
 0x1a1   :  { %v472_v26 = vmul.f32 0.0078125, %v431_v55  ;;  %v473_v6 = vmul.f32 0.0078125, %v433_v25  ;;  %v534_v7 = vmul.f32 %v2920_v32, %v2920_v32  ;;  %v535_v63 = vmul.f32 %v2923_v31, %v2923_v31 }
 0x1a3   :  { %587 = vadd.xlane.f32.xlu1 %v534_v7  ;;  %589 = vadd.xlane.f32.xlu0 %v535_v63  ;;  %v2930_v4 = vsub.f32 %v2737_v36, %v472_v26  ;;  %v2933_v34 = vsub.f32 %v2734_v35, %v473_v6 }
 0x1a4   :  { %v435_v33 = vpop.xlane.xlu1 %434  ;;  %v437_v5 = vpop.xlane.xlu0 %436 }
 0x1a5   :  { %v474_v8 = vmul.f32 0.0078125, %v435_v33  ;;  %v475_v9 = vmul.f32 0.0078125, %v437_v5  ;;  %v536_v28 = vmul.f32 %v2930_v4, %v2930_v4  ;;  %v537_v27 = vmul.f32 %v2933_v34, %v2933_v34 }
 0x1a7   :  { %591 = vadd.xlane.f32.xlu1 %v536_v28  ;;  %593 = vadd.xlane.f32.xlu0 %v537_v27  ;;  %v2940_v13 = vsub.f32 %v2745_v38, %v474_v8  ;;  %v2943_v36 = vsub.f32 %v2742_v37, %v475_v9 }
 0x1a8   :  { %v439_v35 = vpop.xlane.xlu1 %438  ;;  %v441_v14 = vpop.xlane.xlu0 %440 }
 0x1a9   :  { %v476_v15 = vmul.f32 0.0078125, %v439_v35  ;;  %v477_v16 = vmul.f32 0.0078125, %v441_v14  ;;  %v538_v17 = vmul.f32 %v2940_v13, %v2940_v13  ;;  %v539_v20 = vmul.f32 %v2943_v36, %v2943_v36 }
 0x1aa   :  { %v739_v35 = vsub.s32 1, %v2621_v39 }
 0x1ab   :  { %595 = vadd.xlane.f32.xlu1 %v538_v17  ;;  %597 = vadd.xlane.f32.xlu0 %v539_v20  ;;  %v2950_v59 = vsub.f32 %v2753_v43, %v476_v15  ;;  %v2953_v38 = vsub.f32 %v2750_v40, %v477_v16  ;;  %v775_v20 = vsub.s32 2, %v2621_v39 }
 0x1ac   :  { %v443_v37 = vpop.xlane.xlu1 %442  ;;  %v445_v30 = vpop.xlane.xlu0 %444 }
 0x1ad   :  { %v478_v29 = vmul.f32 0.0078125, %v443_v37  ;;  %v479_v19 = vmul.f32 0.0078125, %v445_v30  ;;  %v540_v48 = vmul.f32 %v2950_v59, %v2950_v59  ;;  %v541_v49 = vmul.f32 %v2953_v38, %v2953_v38 }
 0x1af   :  { %v2960_v1 = vsub.f32 %v2758_v44, %v479_v19  ;;  %599 = vadd.xlane.f32.xlu1 %v540_v48  ;;  %601 = vadd.xlane.f32.xlu0 %v541_v49  ;;  %v2963_v43 = vsub.f32 %v2761_v45, %v478_v29  ;;  %v2977_v29 = vrot.slane %v2627_v41, %v739_v35 }
 0x1b0   :  { %v447_v40 = vpop.xlane.xlu1 %446 }
 0x1b1   :  { %v480_v50 = vmul.f32 0.0078125, %v447_v40  ;;  %v542_v51 = vmul.f32 %v2963_v43, %v2963_v43  ;;  %v543_v54 = vmul.f32 %v2960_v1, %v2960_v1 }
 0x1b3   :  { %v2970_v55 = vsub.f32 %v2689_v23, %v480_v50  ;;  %603 = vadd.xlane.f32.xlu1 %v542_v51  ;;  %605 = vadd.xlane.f32.xlu0 %v543_v54  ;;  %v2981_v54 = vrot.slane %v2627_v41, %v775_v20 }
 0x1b5   :  { %v544_v44 = vmul.f32 %v2970_v55, %v2970_v55 }
 0x1b7   :  { %607 = vadd.xlane.f32.xlu1 %v544_v44 }
 0x204   :  { %v546_v25 = vpop.xlane.xlu0 %545 }
 0x205   :  { %v609_v45 = vmul.f32 0.0078125, %v546_v25 }
 0x207   :  { %v641_v26 = vadd.f32 1e-05, %v609_v45 }
 0x208   :  { %v548_v6 = vpop.xlane.xlu1 %547  ;;  %v550_v7 = vpop.xlane.xlu0 %549 }
 0x209   :  { %2294 = vrsqrt.f32 %v641_v26  ;;  %v610_v63 = vmul.f32 0.0078125, %v548_v6  ;;  %v611_v33 = vmul.f32 0.0078125, %v550_v7 }
 0x20b   :  { %v642_v5 = vadd.f32 1e-05, %v610_v63  ;;  %v643_v8 = vadd.f32 1e-05, %v611_v33 }
 0x20c   :  { %v552_v9 = vpop.xlane.xlu1 %551  ;;  %v554_v28 = vpop.xlane.xlu0 %553 }
 0x20d   :  { %2296 = vrsqrt.f32 %v642_v5  ;;  %v612_v23 = vmul.f32 0.0078125, %v552_v9  ;;  %v613_v27 = vmul.f32 0.0078125, %v554_v28 }
 0x20e   :  { %2298 = vrsqrt.f32 %v643_v8 }
 0x20f   :  { %v644_v14 = vadd.f32 1e-05, %v612_v23  ;;  %v645_v15 = vadd.f32 1e-05, %v613_v27 }
 0x210   :  { %v556_v16 = vpop.xlane.xlu1 %555  ;;  %v558_v17 = vpop.xlane.xlu0 %557 }
 0x211   :  { %2300 = vrsqrt.f32 %v644_v14  ;;  %v614_v37 = vmul.f32 0.0078125, %v556_v16  ;;  %v615_v30 = vmul.f32 0.0078125, %v558_v17 }
 0x212   :  { %2302 = vrsqrt.f32 %v645_v15 }
 0x213   :  { %v2295_v19 = vpop.eup %2294  ;;  %v646_v48 = vadd.f32 1e-05, %v614_v37  ;;  %v647_v49 = vadd.f32 1e-05, %v615_v30 }
 0x214   :  { %v560_v40 = vpop.xlane.xlu1 %559  ;;  %v562_v50 = vpop.xlane.xlu0 %561  ;;  %v705_v51 = vmul.f32 %v2295_v19, %v2779_v56 }
 0x215   :  { %2304 = vrsqrt.f32 %v646_v48  ;;  %v616_v44 = vmul.f32 0.0078125, %v560_v40  ;;  %v617_v25 = vmul.f32 0.0078125, %v562_v50 }
 0x216   :  { %2306 = vrsqrt.f32 %v647_v49  ;;  %v741_v45 = vmul.f32 %v2977_v29, %v705_v51 }
 0x217   :  { %v2297_v26 = vpop.eup %2296  ;;  %v648_v6 = vadd.f32 1e-05, %v616_v44  ;;  %v649_v7 = vadd.f32 1e-05, %v617_v25 }
 0x218   :  { %v2299_v63 = vpop.eup %2298  ;;  %v706_v33 = vmul.f32 %v2297_v26, %v2787_v3  ;;  %v564_v5 = vpop.xlane.xlu1 %563  ;;  %v777_v9 = vadd.f32 %v2981_v54, %v741_v45 }
 0x219   :  { %v566_v8 = vpop.xlane.xlu0 %565  ;;  %2308 = vrsqrt.f32 %v648_v6  ;;  %v618_v56 = vmul.f32 0.0078125, %v564_v5  ;;  %v707_v28 = vmul.f32 %v2299_v63, %v2784_v2 }
 0x21a   :  { %v619_v41 = vmul.f32 0.0078125, %v566_v8  ;;  %2310 = vrsqrt.f32 %v649_v7  ;;  %v809_v23 = vmax.f32 %v777_v9, 0.0  ;;  %v742_v27 = vmul.f32 %v2977_v29, %v706_v33 }
 0x21b   :  { %v2301_v35 = vpop.eup %2300  ;;  %v650_v14 = vadd.f32 1e-05, %v618_v56  ;;  %v743_v16 = vmul.f32 %v2977_v29, %v707_v28 }
 0x21c   :  { %v651_v15 = vadd.f32 1e-05, %v619_v41  ;;  %v2303_v17 = vpop.eup %2302  ;;  %v568_v3 = vpop.xlane.xlu1 %567  ;;  %2087 = vmatprep.mubr.f32.mxu1 %v809_v23  ;;  %v778_v37 = vadd.f32 %v2981_v54, %v742_v27  ;;  %v708_v30 = vmul.f32 %v2301_v35, %v2794_v11 }
 0x21d   :  { %v570_v20 = vpop.xlane.xlu0 %569  ;;  %2312 = vrsqrt.f32 %v650_v14  ;;  %v620_v19 = vmul.f32 0.0078125, %v568_v3  ;;  %v779_v48 = vadd.f32 %v2981_v54, %v743_v16  ;;  %v709_v50 = vmul.f32 %v2303_v17, %v2797_v53 }
 0x21e   :  { %v621_v2 = vmul.f32 0.0078125, %v570_v20  ;;  %2314 = vrsqrt.f32 %v651_v15  ;;  %v810_v49 = vmax.f32 %v778_v37, 0.0  ;;  %v744_v40 = vmul.f32 %v2977_v29, %v708_v30 }
 0x21f   :  { %v2305_v51 = vpop.eup %2304  ;;  %v652_v44 = vadd.f32 1e-05, %v620_v19  ;;  %v811_v45 = vmax.f32 %v779_v48, 0.0  ;;  %v745_v63 = vmul.f32 %v2977_v29, %v709_v50 }
 0x220   :  { %v653_v25 = vadd.f32 1e-05, %v621_v2  ;;  %v2307_v26 = vpop.eup %2306  ;;  %v572_v6 = vpop.xlane.xlu1 %571  ;;  %2088 = vmatmul.mubr.f32.vlgmr.msra.gmra.mrb[16].mxu1 %v810_v49  ;;  %v780_v11 = vadd.f32 %v2981_v54, %v744_v40  ;;  %v710_v33 = vmul.f32 %v2305_v51, %v2804_v21 }
 0x221   :  { %v574_v7 = vpop.xlane.xlu0 %573  ;;  %2316 = vrsqrt.f32 %v652_v44  ;;  %v622_v5 = vmul.f32 0.0078125, %v572_v6  ;;  %2090 = vmatprep.mubr.f32.mxu1 %v811_v45  ;;  %v711_v53 = vmul.f32 %v2307_v26, %v2807_v58  ;;  %v781_v56 = vadd.f32 %v2981_v54, %v745_v63 }
 0x222   :  { %v623_v8 = vmul.f32 0.0078125, %v574_v7  ;;  %2318 = vrsqrt.f32 %v653_v25  ;;  %v812_v9 = vmax.f32 %v780_v11, 0.0  ;;  %v746_v41 = vmul.f32 %v2977_v29, %v710_v33 }
 0x223   :  { %v2309_v28 = vpop.eup %2308  ;;  %v654_v23 = vadd.f32 1e-05, %v622_v5  ;;  %v747_v35 = vmul.f32 %v2977_v29, %v711_v53  ;;  %v813_v16 = vmax.f32 %v781_v56, 0.0 }
 0x224   :  { %v655_v27 = vadd.f32 1e-05, %v623_v8  ;;  %v2311_v14 = vpop.eup %2310  ;;  %v576_v15 = vpop.xlane.xlu1 %575  ;;  %2091 = vmatmul.mubr.f32.gmra.mrb[18].mxu1 %v812_v9  ;;  %v782_v17 = vadd.f32 %v2981_v54, %v746_v41  ;;  %v712_v58 = vmul.f32 %v2309_v28, %v2814_v42 }
 0x225   :  { %v578_v21 = vpop.xlane.xlu0 %577  ;;  %2320 = vrsqrt.f32 %v654_v23  ;;  %v624_v3 = vmul.f32 0.0078125, %v576_v15  ;;  %v783_v37 = vadd.f32 %v2981_v54, %v747_v35  ;;  %2093 = vmatprep.mubr.f32.mxu1 %v813_v16  ;;  %v713_v2 = vmul.f32 %v2311_v14, %v2817_v0 }
 0x226   :  { %v625_v20 = vmul.f32 0.0078125, %v578_v21  ;;  %2322 = vrsqrt.f32 %v655_v27  ;;  %v814_v30 = vmax.f32 %v782_v17, 0.0  ;;  %v748_v19 = vmul.f32 %v2977_v29, %v712_v58 }
 0x227   :  { %v2313_v48 = vpop.eup %2312  ;;  %v656_v49 = vadd.f32 1e-05, %v624_v3  ;;  %v815_v50 = vmax.f32 %v783_v37, 0.0  ;;  %v749_v45 = vmul.f32 %v2977_v29, %v713_v2 }
 0x228   :  { %v657_v40 = vadd.f32 1e-05, %v625_v20  ;;  %v2315_v51 = vpop.eup %2314  ;;  %v580_v44 = vpop.xlane.xlu1 %579  ;;  %2094 = vmatmul.mubr.f32.gmra.mrb[20].mxu1 %v814_v30  ;;  %v784_v25 = vadd.f32 %v2981_v54, %v748_v19  ;;  %v714_v26 = vmul.f32 %v2313_v48, %v2830_v61 }
 0x229   :  { %v582_v42 = vpop.xlane.xlu0 %581  ;;  %2324 = vrsqrt.f32 %v656_v49  ;;  %v626_v6 = vmul.f32 0.0078125, %v580_v44  ;;  %2096 = vmatprep.mubr.f32.mxu1 %v815_v50  ;;  %v715_v0 = vmul.f32 %v2315_v51, %v2833_v62  ;;  %v785_v63 = vadd.f32 %v2981_v54, %v749_v45 }
 0x22a   :  { %v627_v7 = vmul.f32 0.0078125, %v582_v42  ;;  %2326 = vrsqrt.f32 %v657_v40  ;;  %v816_v11 = vmax.f32 %v784_v25, 0.0  ;;  %v750_v33 = vmul.f32 %v2977_v29, %v714_v26 }
 0x22b   :  { %v2317_v5 = vpop.eup %2316  ;;  %v658_v8 = vadd.f32 1e-05, %v626_v6  ;;  %v751_v9 = vmul.f32 %v2977_v29, %v715_v0  ;;  %v817_v28 = vmax.f32 %v785_v63, 0.0 }
 0x22c   :  { %v659_v53 = vadd.f32 1e-05, %v627_v7  ;;  %v2319_v56 = vpop.eup %2318  ;;  %v584_v41 = vpop.xlane.xlu1 %583  ;;  %2097 = vmatmul.mubr.f32.gmra.mrb[22].mxu1 %v816_v11  ;;  %v786_v23 = vadd.f32 %v2981_v54, %v750_v33  ;;  %v716_v62 = vmul.f32 %v2317_v5, %v2846_v10 }
 0x22d   :  { %v586_v61 = vpop.xlane.xlu0 %585  ;;  %2328 = vrsqrt.f32 %v658_v8  ;;  %v628_v27 = vmul.f32 0.0078125, %v584_v41  ;;  %v787_v14 = vadd.f32 %v2981_v54, %v751_v9  ;;  %2099 = vmatprep.mubr.f32.mxu1 %v817_v28  ;;  %v717_v16 = vmul.f32 %v2319_v56, %v2849_v52 }
 0x22e   :  { %v629_v35 = vmul.f32 0.0078125, %v586_v61  ;;  %2330 = vrsqrt.f32 %v659_v53  ;;  %v818_v15 = vmax.f32 %v786_v23, 0.0  ;;  %v752_v21 = vmul.f32 %v2977_v29, %v716_v62 }
 0x22f   :  { %v2321_v17 = vpop.eup %2320  ;;  %v660_v58 = vadd.f32 1e-05, %v628_v27  ;;  %v819_v20 = vmax.f32 %v787_v14, 0.0  ;;  %v753_v2 = vmul.f32 %v2977_v29, %v717_v16 }
 0x230   :  { %v661_v3 = vadd.f32 1e-05, %v629_v35  ;;  %v2323_v37 = vpop.eup %2322  ;;  %v588_v30 = vpop.xlane.xlu1 %587  ;;  %2100 = vmatmul.mubr.f32.gmra.mrb[24].mxu1 %v818_v15  ;;  %v788_v19 = vadd.f32 %v2981_v54, %v752_v21  ;;  %v718_v48 = vmul.f32 %v2321_v17, %v2862_v24 }
 0x231   :  { %v590_v10 = vpop.xlane.xlu0 %589  ;;  %2332 = vrsqrt.f32 %v660_v58  ;;  %v630_v49 = vmul.f32 0.0078125, %v588_v30  ;;  %2102 = vmatprep.mubr.f32.mxu1 %v819_v20  ;;  %v719_v52 = vmul.f32 %v2323_v37, %v2865_v46  ;;  %v789_v51 = vadd.f32 %v2981_v54, %v753_v2 }
 0x232   :  { %v631_v40 = vmul.f32 0.0078125, %v590_v10  ;;  %2334 = vrsqrt.f32 %v661_v3  ;;  %v820_v50 = vmax.f32 %v788_v19, 0.0  ;;  %v754_v44 = vmul.f32 %v2977_v29, %v718_v48 }
 0x233   :  { %v2325_v42 = vpop.eup %2324  ;;  %v662_v25 = vadd.f32 1e-05, %v630_v49  ;;  %v755_v26 = vmul.f32 %v2977_v29, %v719_v52  ;;  %v821_v0 = vmax.f32 %v789_v51, 0.0 }
 0x234   :  { %v663_v45 = vadd.f32 1e-05, %v631_v40  ;;  %v2327_v6 = vpop.eup %2326  ;;  %v592_v7 = vpop.xlane.xlu1 %591  ;;  %2103 = vmatmul.mubr.f32.gmra.mrb[26].mxu1 %v820_v50  ;;  %v790_v11 = vadd.f32 %v2981_v54, %v754_v44  ;;  %v720_v46 = vmul.f32 %v2325_v42, %v2878_v57 }
 0x235   :  { %v594_v24 = vpop.xlane.xlu0 %593  ;;  %2336 = vrsqrt.f32 %v662_v25  ;;  %v632_v63 = vmul.f32 0.0078125, %v592_v7  ;;  %v791_v5 = vadd.f32 %v2981_v54, %v755_v26  ;;  %2105 = vmatprep.mubr.f32.mxu1 %v821_v0  ;;  %v721_v9 = vmul.f32 %v2327_v6, %v2881_v60 }
 0x236   :  { %v633_v33 = vmul.f32 0.0078125, %v594_v24  ;;  %2338 = vrsqrt.f32 %v663_v45  ;;  %v822_v8 = vmax.f32 %v790_v11, 0.0  ;;  %v756_v53 = vmul.f32 %v2977_v29, %v720_v46 }
 0x237   :  { %v2329_v56 = vpop.eup %2328  ;;  %v664_v41 = vadd.f32 1e-05, %v632_v63  ;;  %v823_v28 = vmax.f32 %v791_v5, 0.0  ;;  %v757_v35 = vmul.f32 %v2977_v29, %v721_v9 }
 0x238   :  { %v665_v61 = vadd.f32 1e-05, %v633_v33  ;;  %v2331_v23 = vpop.eup %2330  ;;  %v596_v62 = vpop.xlane.xlu1 %595  ;;  %2106 = vmatmul.mubr.f32.gmra.mrb[28].mxu1 %v822_v8  ;;  %v792_v27 = vadd.f32 %v2981_v54, %v756_v53  ;;  %v722_v14 = vmul.f32 %v2329_v56, %v2894_v47 }
 0x239   :  { %v598_v57 = vpop.xlane.xlu0 %597  ;;  %2340 = vrsqrt.f32 %v664_v41  ;;  %v634_v15 = vmul.f32 0.0078125, %v596_v62  ;;  %2108 = vmatprep.mubr.f32.mxu1 %v823_v28  ;;  %v723_v60 = vmul.f32 %v2331_v23, %v2897_v12  ;;  %v793_v17 = vadd.f32 %v2981_v54, %v757_v35 }
 0x23a   :  { %v635_v21 = vmul.f32 0.0078125, %v598_v57  ;;  %2342 = vrsqrt.f32 %v665_v61  ;;  %v824_v16 = vmax.f32 %v792_v27, 0.0  ;;  %v758_v58 = vmul.f32 %v2977_v29, %v722_v14 }
 0x23b   :  { %v2333_v3 = vpop.eup %2332  ;;  %v666_v20 = vadd.f32 1e-05, %v634_v15  ;;  %v759_v30 = vmul.f32 %v2977_v29, %v723_v60  ;;  %v825_v2 = vmax.f32 %v793_v17, 0.0 }
 0x23c   :  { %v667_v37 = vadd.f32 1e-05, %v635_v21  ;;  %v2335_v10 = vpop.eup %2334  ;;  %v600_v19 = vpop.xlane.xlu1 %599  ;;  %2109 = vmatmul.mubr.f32.gmra.mrb[30].mxu1 %v824_v16  ;;  %v794_v48 = vadd.f32 %v2981_v54, %v758_v58  ;;  %v724_v12 = vmul.f32 %v2333_v3, %v2910_v22 }
 0x23d   :  { %v602_v47 = vpop.xlane.xlu0 %601  ;;  %2344 = vrsqrt.f32 %v666_v20  ;;  %v636_v49 = vmul.f32 0.0078125, %v600_v19  ;;  %v795_v52 = vadd.f32 %v2981_v54, %v759_v30  ;;  %2111 = vmatprep.mubr.f32.mxu1 %v825_v2  ;;  %v725_v44 = vmul.f32 %v2335_v10, %v2913_v18 }
 0x23e   :  { %v637_v40 = vmul.f32 0.0078125, %v602_v47  ;;  %2346 = vrsqrt.f32 %v667_v37  ;;  %v826_v50 = vmax.f32 %v794_v48, 0.0  ;;  %v760_v51 = vmul.f32 %v2977_v29, %v724_v12 }
 0x23f   :  { %v2337_v42 = vpop.eup %2336  ;;  %v668_v25 = vadd.f32 1e-05, %v636_v49  ;;  %v827_v26 = vmax.f32 %v795_v52, 0.0  ;;  %v761_v0 = vmul.f32 %v2977_v29, %v725_v44 }
 0x240   :  { %v669_v45 = vadd.f32 1e-05, %v637_v40  ;;  %v2339_v6 = vpop.eup %2338  ;;  %v604_v7 = vpop.xlane.xlu1 %603  ;;  %2112 = vmatmul.mubr.f32.gmra.mrb[32].mxu1 %v826_v50  ;;  %v796_v24 = vadd.f32 %v2981_v54, %v760_v51  ;;  %v726_v11 = vmul.f32 %v2337_v42, %v2920_v32 }
 0x241   :  { %v606_v22 = vpop.xlane.xlu0 %605  ;;  %2348 = vrsqrt.f32 %v668_v25  ;;  %v638_v46 = vmul.f32 0.0078125, %v604_v7  ;;  %2114 = vmatprep.mubr.f32.mxu1 %v827_v26  ;;  %v727_v18 = vmul.f32 %v2339_v6, %v2923_v31  ;;  %v797_v5 = vadd.f32 %v2981_v54, %v761_v0 }
 0x242   :  { %v639_v63 = vmul.f32 0.0078125, %v606_v22  ;;  %2350 = vrsqrt.f32 %v669_v45  ;;  %v828_v33 = vmax.f32 %v796_v24, 0.0  ;;  %v762_v8 = vmul.f32 %v2977_v29, %v726_v11 }
 0x243   :  { %v2341_v53 = vpop.eup %2340  ;;  %v670_v9 = vadd.f32 1e-05, %v638_v46  ;;  %v763_v41 = vmul.f32 %v2977_v29, %v727_v18  ;;  %v829_v32 = vmax.f32 %v797_v5, 0.0  ;;  %v859_v18 = vsub.s32 3, %v2621_v39 }
 0x244   :  { %v671_v56 = vadd.f32 1e-05, %v639_v63  ;;  %v2343_v61 = vpop.eup %2342  ;;  %v608_v28 = vpop.xlane.xlu1 %607  ;;  %2115 = vmatmul.mubr.f32.gmra.mrb[34].mxu1 %v828_v33  ;;  %v798_v23 = vadd.f32 %v2981_v54, %v762_v8  ;;  %v728_v62 = vmul.f32 %v2341_v53, %v2930_v4  ;;  %v3082_v33 = vld [vmem:[%s3581_s4] sm:$0xff] }
 0x245   :  { %2352 = vrsqrt.f32 %v670_v9  ;;  %v640_v31 = vmul.f32 0.0078125, %v608_v28  ;;  %v799_v57 = vadd.f32 %v2981_v54, %v763_v41  ;;  %v729_v27 = vmul.f32 %v2343_v61, %v2933_v34  ;;  %2117 = vmatprep.mubr.f32.mxu1 %v829_v32 }
 0x246   :  { %2354 = vrsqrt.f32 %v671_v56  ;;  %v830_v35 = vmax.f32 %v798_v23, 0.0  ;;  %v764_v14 = vmul.f32 %v2977_v29, %v728_v62 }
 0x247   :  { %v2345_v15 = vpop.eup %2344  ;;  %v672_v21 = vadd.f32 1e-05, %v640_v31  ;;  %v831_v60 = vmax.f32 %v799_v57, 0.0  ;;  %v765_v16 = vmul.f32 %v2977_v29, %v729_v27 }
 0x248   :  { %v2347_v17 = vpop.eup %2346  ;;  %2118 = vmatmul.mubr.f32.gmra.mrb[36].mxu1 %v830_v35  ;;  %v800_v4 = vadd.f32 %v2981_v54, %v764_v14  ;;  %v730_v58 = vmul.f32 %v2345_v15, %v2940_v13 }
 0x249   :  { %2356 = vrsqrt.f32 %v672_v21  ;;  %2120 = vmatprep.mubr.f32.mxu1 %v831_v60  ;;  %v801_v34 = vadd.f32 %v2981_v54, %v765_v16  ;;  %v731_v3 = vmul.f32 %v2347_v17, %v2943_v36 }
 0x24a   :  { %v832_v20 = vmax.f32 %v800_v4, 0.0  ;;  %v766_v37 = vmul.f32 %v2977_v29, %v730_v58 }
 0x24b   :  { %v2349_v30 = vpop.eup %2348  ;;  %v833_v10 = vmax.f32 %v801_v34, 0.0  ;;  %v767_v19 = vmul.f32 %v2977_v29, %v731_v3 }
 0x24c   :  { %v2351_v47 = vpop.eup %2350  ;;  %2121 = vmatmul.mubr.f32.gmra.mrb[38].mxu1 %v832_v20  ;;  %v802_v2 = vadd.f32 %v2981_v54, %v766_v37  ;;  %v732_v48 = vmul.f32 %v2349_v30, %v2950_v59 }
 0x24d   :  { %2123 = vmatprep.mubr.f32.mxu1 %v833_v10  ;;  %v803_v13 = vadd.f32 %v2981_v54, %v767_v19  ;;  %v733_v12 = vmul.f32 %v2351_v47, %v2953_v38 }
 0x24e   :  { %v834_v49 = vmax.f32 %v802_v2, 0.0  ;;  %v768_v36 = vmul.f32 %v2977_v29, %v732_v48 }
 0x24f   :  { %v2353_v40 = vpop.eup %2352  ;;  %v835_v52 = vmax.f32 %v803_v13, 0.0  ;;  %v769_v50 = vmul.f32 %v2977_v29, %v733_v12 }
 0x250   :  { %v2355_v51 = vpop.eup %2354  ;;  %2124 = vmatmul.mubr.f32.gmra.mrb[40].mxu1 %v834_v49  ;;  %v804_v44 = vadd.f32 %v2981_v54, %v768_v36  ;;  %v734_v42 = vmul.f32 %v2353_v40, %v2963_v43 }
 0x251   :  { %2126 = vmatprep.mubr.f32.mxu1 %v835_v52  ;;  %v805_v59 = vadd.f32 %v2981_v54, %v769_v50  ;;  %v735_v25 = vmul.f32 %v2355_v51, %v2960_v1 }
 0x252   :  { %v836_v45 = vmax.f32 %v804_v44, 0.0  ;;  %v770_v38 = vmul.f32 %v2977_v29, %v734_v42 }
 0x253   :  { %v2357_v26 = vpop.eup %2356  ;;  %v837_v6 = vmax.f32 %v805_v59, 0.0  ;;  %v771_v7 = vmul.f32 %v2977_v29, %v735_v25 }
 0x254   :  { %2127 = vmatmul.mubr.f32.gmra.mrb[42].mxu1 %v836_v45  ;;  %v806_v22 = vadd.f32 %v2981_v54, %v770_v38  ;;  %v736_v24 = vmul.f32 %v2357_v26, %v2970_v55  ;;  %v3085_v55 = vrot.slane %v3082_v33, %v859_v18 }
 0x255   :  { %2129 = vmatprep.mubr.f32.mxu1 %v837_v6  ;;  %v807_v43 = vadd.f32 %v2981_v54, %v771_v7 }
 0x256   :  { %v838_v0 = vmax.f32 %v806_v22, 0.0  ;;  %v772_v11 = vmul.f32 %v2977_v29, %v736_v24 }
 0x257   :  { %v839_v46 = vmax.f32 %v807_v43, 0.0 }
 0x258   :  { %2130 = vmatmul.mubr.f32.gmra.mrb[44].mxu1 %v838_v0  ;;  %v808_v1 = vadd.f32 %v2981_v54, %v772_v11 }
 0x259   :  { %2132 = vmatprep.mubr.f32.mxu1 %v839_v46 }
 0x25a   :  { %v840_v63 = vmax.f32 %v808_v1, 0.0 }
 0x25c   :  { %2133 = vmatmul.mubr.f32.gmra.mrb[46].mxu1 %v840_v63 }
 0x2f3   :  { %v2089_v5 = vpop.f32.mrb[16].mxu1 }
 0x2f4   :  { %v3088_v29 = vadd.f32 %v2089_v5, %v3085_v55  ;;  %v927_v8 = vpop.f32.mrb[17].mxu1 }
 0x2f5   :  { %v3091_v54 = vadd.f32 %v927_v8, %v3085_v55 }
 0x2f6   :  { %1088 = vadd.xlane.f32.xlu1 %v3088_v29 }
 0x2f7   :  { %1086 = vadd.xlane.f32.xlu0 %v3091_v54  ;;  %v2092_v53 = vpop.f32.mrb[18].mxu1 }
 0x2f8   :  { %v3096_v9 = vadd.f32 %v2092_v53, %v3085_v55  ;;  %v937_v56 = vpop.f32.mrb[19].mxu1 }
 0x2f9   :  { %v3099_v41 = vadd.f32 %v937_v56, %v3085_v55  ;;  %v1542_v56 = vld [vmem:[%s3580_s3] sm:$0xff] }
 0x2fa   :  { %1092 = vadd.xlane.f32.xlu1 %v3096_v9 }
 0x2fb   :  { %1090 = vadd.xlane.f32.xlu0 %v3099_v41  ;;  %v2095_v61 = vpop.f32.mrb[20].mxu1 }
 0x2fc   :  { %v3104_v28 = vadd.f32 %v2095_v61, %v3085_v55  ;;  %v947_v32 = vpop.f32.mrb[21].mxu1  ;;  %v1543_v61 = vld [vmem:[%s3580_s3 + $0x8] sm:$0xff] }
 0x2fd   :  { %v3107_v23 = vadd.f32 %v947_v32, %v3085_v55  ;;  %v1544_v32 = vld [vmem:[%s3580_s3 + $0x10] sm:$0xff] }
 0x2fe   :  { %1096 = vadd.xlane.f32.xlu1 %v3104_v28 }
 0x2ff   :  { %1094 = vadd.xlane.f32.xlu0 %v3107_v23  ;;  %v2098_v62 = vpop.f32.mrb[22].mxu1 }
 0x300   :  { %v3112_v31 = vadd.f32 %v2098_v62, %v3085_v55  ;;  %v957_v57 = vpop.f32.mrb[23].mxu1  ;;  %v2255_v62 = vpack.c.bf16 %v1543_v61, %v1542_v56 }
 0x301   :  { %v3115_v27 = vadd.f32 %v957_v57, %v3085_v55 }
 0x302   :  { %1100 = vadd.xlane.f32.xlu1 %v3112_v31  ;;  %2256 = vmatprep.subr.bf16.mxu0 %v2255_v62 }
 0x303   :  { %1098 = vadd.xlane.f32.xlu0 %v3115_v27  ;;  %v2101_v35 = vpop.f32.mrb[24].mxu1  ;;  %2258 = vmatpush3.bf16.msra.mxu0 %v2255_v62 }
 0x304   :  { %v3120_v14 = vadd.f32 %v2101_v35, %v3085_v55  ;;  %v967_v15 = vpop.f32.mrb[25].mxu1 }
 0x305   :  { %v3123_v21 = vadd.f32 %v967_v15, %v3085_v55 }
 0x306   :  { %1104 = vadd.xlane.f32.xlu1 %v3120_v14 }
 0x307   :  { %1102 = vadd.xlane.f32.xlu0 %v3123_v21  ;;  %v2104_v60 = vpop.f32.mrb[26].mxu1 }
 0x308   :  { %v3128_v16 = vadd.f32 %v2104_v60, %v3085_v55  ;;  %v977_v17 = vpop.f32.mrb[27].mxu1 }
 0x309   :  { %v3131_v4 = vadd.f32 %v977_v17, %v3085_v55 }
 0x30a   :  { %1108 = vadd.xlane.f32.xlu1 %v3128_v16 }
 0x30b   :  { %1106 = vadd.xlane.f32.xlu0 %v3131_v4  ;;  %v2107_v58 = vpop.f32.mrb[28].mxu1 }
 0x30c   :  { %v3136_v34 = vadd.f32 %v2107_v58, %v3085_v55  ;;  %v987_v3 = vpop.f32.mrb[29].mxu1 }
 0x30d   :  { %v3139_v20 = vadd.f32 %v987_v3, %v3085_v55 }
 0x30e   :  { %1112 = vadd.xlane.f32.xlu1 %v3136_v34 }
 0x30f   :  { %1110 = vadd.xlane.f32.xlu0 %v3139_v20  ;;  %v2110_v37 = vpop.f32.mrb[30].mxu1 }
 0x310   :  { %v3144_v30 = vadd.f32 %v2110_v37, %v3085_v55  ;;  %v997_v10 = vpop.f32.mrb[31].mxu1 }
 0x311   :  { %v3147_v19 = vadd.f32 %v997_v10, %v3085_v55 }
 0x312   :  { %1116 = vadd.xlane.f32.xlu1 %v3144_v30 }
 0x313   :  { %1114 = vadd.xlane.f32.xlu0 %v3147_v19  ;;  %v2113_v47 = vpop.f32.mrb[32].mxu1 }
 0x314   :  { %v3152_v2 = vadd.f32 %v2113_v47, %v3085_v55  ;;  %v1007_v48 = vpop.f32.mrb[33].mxu1 }
 0x315   :  { %v3155_v13 = vadd.f32 %v1007_v48, %v3085_v55 }
 0x316   :  { %1120 = vadd.xlane.f32.xlu1 %v3152_v2 }
 0x317   :  { %1118 = vadd.xlane.f32.xlu0 %v3155_v13  ;;  %v2116_v12 = vpop.f32.mrb[34].mxu1 }
 0x318   :  { %v3160_v49 = vadd.f32 %v2116_v12, %v3085_v55  ;;  %v1017_v36 = vpop.f32.mrb[35].mxu1 }
 0x319   :  { %v3163_v40 = vadd.f32 %v1017_v36, %v3085_v55 }
 0x31a   :  { %1124 = vadd.xlane.f32.xlu1 %v3160_v49 }
 0x31b   :  { %1122 = vadd.xlane.f32.xlu0 %v3163_v40  ;;  %v2119_v52 = vpop.f32.mrb[36].mxu1 }
 0x31c   :  { %v3168_v50 = vadd.f32 %v2119_v52, %v3085_v55  ;;  %v1027_v51 = vpop.f32.mrb[37].mxu1 }
 0x31d   :  { %v3171_v44 = vadd.f32 %v1027_v51, %v3085_v55 }
 0x31e   :  { %1128 = vadd.xlane.f32.xlu1 %v3168_v50 }
 0x31f   :  { %1126 = vadd.xlane.f32.xlu0 %v3171_v44  ;;  %v2122_v42 = vpop.f32.mrb[38].mxu1 }
 0x320   :  { %v3176_v59 = vadd.f32 %v2122_v42, %v3085_v55  ;;  %v1037_v25 = vpop.f32.mrb[39].mxu1 }
 0x321   :  { %v3179_v45 = vadd.f32 %v1037_v25, %v3085_v55 }
 0x322   :  { %1132 = vadd.xlane.f32.xlu1 %v3176_v59 }
 0x323   :  { %1130 = vadd.xlane.f32.xlu0 %v3179_v45  ;;  %v2125_v38 = vpop.f32.mrb[40].mxu1 }
 0x324   :  { %v3184_v26 = vadd.f32 %v2125_v38, %v3085_v55  ;;  %v1047_v6 = vpop.f32.mrb[41].mxu1 }
 0x325   :  { %v3187_v7 = vadd.f32 %v1047_v6, %v3085_v55 }
 0x326   :  { %1136 = vadd.xlane.f32.xlu1 %v3184_v26 }
 0x327   :  { %1134 = vadd.xlane.f32.xlu0 %v3187_v7  ;;  %v2128_v22 = vpop.f32.mrb[42].mxu1 }
 0x328   :  { %v3192_v24 = vadd.f32 %v2128_v22, %v3085_v55  ;;  %v1057_v43 = vpop.f32.mrb[43].mxu1 }
 0x329   :  { %v3195_v0 = vadd.f32 %v1057_v43, %v3085_v55 }
 0x32a   :  { %1140 = vadd.xlane.f32.xlu1 %v3192_v24 }
 0x32b   :  { %1138 = vadd.xlane.f32.xlu0 %v3195_v0  ;;  %v2131_v11 = vpop.f32.mrb[44].mxu1 }
 0x32c   :  { %v3200_v46 = vadd.f32 %v2131_v11, %v3085_v55  ;;  %v1067_v1 = vpop.f32.mrb[45].mxu1 }
 0x32d   :  { %v3203_v63 = vadd.f32 %v1067_v1, %v3085_v55 }
 0x32e   :  { %1144 = vadd.xlane.f32.xlu1 %v3200_v46 }
 0x32f   :  { %1142 = vadd.xlane.f32.xlu0 %v3203_v63  ;;  %v2134_v18 = vpop.f32.mrb[46].mxu1 }
 0x330   :  { %v3208_v5 = vadd.f32 %v2134_v18, %v3085_v55  ;;  %v1077_v8 = vpop.f32.mrb[47].mxu1 }
 0x331   :  { %v3211_v53 = vadd.f32 %v1077_v8, %v3085_v55  ;;  %v1545_v55 = vld [vmem:[%s3580_s3 + $0x18] sm:$0xff] }
 0x332   :  { %1148 = vadd.xlane.f32.xlu1 %v3208_v5  ;;  %v2259_v57 = vpack.c.bf16 %v1545_v55, %v1544_v32 }
 0x333   :  { %1146 = vadd.xlane.f32.xlu0 %v3211_v53 }
 0x334   :  { %2260 = vmatprep.subr.bf16.mxu0 %v2259_v57 }
 0x335   :  { %2262 = vmatpush3.bf16.msra.mxu0 %v2259_v57 }
 0x383   :  { %v1089_v35 = vpop.xlane.xlu1 %1088 }
 0x384   :  { %v1151_v15 = vmul.f32 0.0078125, %v1089_v35  ;;  %v1087_v60 = vpop.xlane.xlu0 %1086 }
 0x385   :  { %v1150_v17 = vmul.f32 0.0078125, %v1087_v60 }
 0x386   :  { %v3228_v58 = vsub.f32 %v3088_v29, %v1151_v15 }
 0x387   :  { %v3231_v3 = vsub.f32 %v3091_v54, %v1150_v17  ;;  %v1093_v37 = vpop.xlane.xlu1 %1092 }
 0x388   :  { %v1153_v10 = vmul.f32 0.0078125, %v1093_v37  ;;  %v1091_v47 = vpop.xlane.xlu0 %1090  ;;  %v1215_v48 = vmul.f32 %v3228_v58, %v3228_v58  ;;  %v1546_v37 = vld [vmem:[%s3580_s3 + $0x20] sm:$0xff] }
 0x389   :  { %v1152_v12 = vmul.f32 0.0078125, %v1091_v47  ;;  %v1214_v36 = vmul.f32 %v3231_v3, %v3231_v3 }
 0x38a   :  { %v3238_v52 = vsub.f32 %v3096_v9, %v1153_v10  ;;  %1248 = vadd.xlane.f32.xlu1 %v1215_v48 }
 0x38b   :  { %v3241_v29 = vsub.f32 %v3099_v41, %v1152_v12  ;;  %v1097_v51 = vpop.xlane.xlu1 %1096  ;;  %1246 = vadd.xlane.f32.xlu0 %v1214_v36 }
 0x38c   :  { %v1155_v54 = vmul.f32 0.0078125, %v1097_v51  ;;  %v1095_v42 = vpop.xlane.xlu0 %1094  ;;  %v1217_v25 = vmul.f32 %v3238_v52, %v3238_v52 }
 0x38d   :  { %v1154_v38 = vmul.f32 0.0078125, %v1095_v42  ;;  %v1216_v6 = vmul.f32 %v3241_v29, %v3241_v29 }
 0x38e   :  { %v3248_v22 = vsub.f32 %v3104_v28, %v1155_v54  ;;  %1252 = vadd.xlane.f32.xlu1 %v1217_v25  ;;  %v1548_v25 = vld [vmem:[%s3580_s3 + $0x30] sm:$0xff] }
 0x38f   :  { %v3251_v9 = vsub.f32 %v3107_v23, %v1154_v38  ;;  %v1101_v41 = vpop.xlane.xlu1 %1100  ;;  %1250 = vadd.xlane.f32.xlu0 %v1216_v6 }
 0x390   :  { %v1157_v43 = vmul.f32 0.0078125, %v1101_v41  ;;  %v1099_v11 = vpop.xlane.xlu0 %1098  ;;  %v1219_v1 = vmul.f32 %v3248_v22, %v3248_v22 }
 0x391   :  { %v1156_v18 = vmul.f32 0.0078125, %v1099_v11  ;;  %v1218_v8 = vmul.f32 %v3251_v9, %v3251_v9 }
 0x392   :  { %v3258_v56 = vsub.f32 %v3112_v31, %v1157_v43  ;;  %1256 = vadd.xlane.f32.xlu1 %v1219_v1 }
 0x393   :  { %v3261_v28 = vsub.f32 %v3115_v27, %v1156_v18  ;;  %v1105_v23 = vpop.xlane.xlu1 %1104  ;;  %1254 = vadd.xlane.f32.xlu0 %v1218_v8 }
 0x394   :  { %v1159_v61 = vmul.f32 0.0078125, %v1105_v23  ;;  %v1103_v32 = vpop.xlane.xlu0 %1102  ;;  %v1221_v62 = vmul.f32 %v3258_v56, %v3258_v56  ;;  %v1550_v23 = vld [vmem:[%s3580_s3 + $0x40] sm:$0xff] }
 0x395   :  { %v1158_v55 = vmul.f32 0.0078125, %v1103_v32  ;;  %v1220_v57 = vmul.f32 %v3261_v28, %v3261_v28 }
 0x396   :  { %v3268_v35 = vsub.f32 %v3120_v14, %v1159_v61  ;;  %1260 = vadd.xlane.f32.xlu1 %v1221_v62  ;;  %v1547_v14 = vld [vmem:[%s3580_s3 + $0x28] sm:$0xff] }
 0x397   :  { %v3271_v31 = vsub.f32 %v3123_v21, %v1158_v55  ;;  %v1109_v27 = vpop.xlane.xlu1 %1108  ;;  %1258 = vadd.xlane.f32.xlu0 %v1220_v57  ;;  %v2263_v47 = vpack.c.bf16 %v1547_v14, %v1546_v37 }
 0x398   :  { %v1161_v15 = vmul.f32 0.0078125, %v1109_v27  ;;  %v1107_v60 = vpop.xlane.xlu0 %1106  ;;  %v1223_v17 = vmul.f32 %v3268_v35, %v3268_v35 }
 0x399   :  { %v1160_v10 = vmul.f32 0.0078125, %v1107_v60  ;;  %v1222_v21 = vmul.f32 %v3271_v31, %v3271_v31  ;;  %2264 = vmatprep.subr.bf16.mxu0 %v2263_v47 }
 0x39a   :  { %v3284_v48 = vsub.f32 %v3128_v16, %v1161_v15  ;;  %1264 = vadd.xlane.f32.xlu1 %v1223_v17  ;;  %2266 = vmatpush3.bf16.msra.mxu0 %v2263_v47  ;;  %v1549_v16 = vld [vmem:[%s3580_s3 + $0x38] sm:$0xff]  ;;  %v1552_v17 = vld [vmem:[%s3580_s3 + $0x50] sm:$0xff] }
 0x39b   :  { %v3287_v12 = vsub.f32 %v3131_v4, %v1160_v10  ;;  %v1113_v36 = vpop.xlane.xlu1 %1112  ;;  %1262 = vadd.xlane.f32.xlu0 %v1222_v21  ;;  %v2267_v6 = vpack.c.bf16 %v1549_v16, %v1548_v25 }
 0x39c   :  { %v1163_v51 = vmul.f32 0.0078125, %v1113_v36  ;;  %v1111_v54 = vpop.xlane.xlu0 %1110  ;;  %v1225_v42 = vmul.f32 %v3284_v48, %v3284_v48 }
 0x39d   :  { %v1162_v38 = vmul.f32 0.0078125, %v1111_v54  ;;  %v1224_v4 = vmul.f32 %v3287_v12, %v3287_v12  ;;  %2268 = vmatprep.subr.bf16.mxu0 %v2267_v6 }
 0x39e   :  { %v3300_v41 = vsub.f32 %v3136_v34, %v1163_v51  ;;  %1268 = vadd.xlane.f32.xlu1 %v1225_v42  ;;  %2270 = vmatpush3.bf16.msra.mxu0 %v2267_v6  ;;  %v1551_v34 = vld [vmem:[%s3580_s3 + $0x48] sm:$0xff]  ;;  %v1554_v42 = vld [vmem:[%s3580_s3 + $0x60] sm:$0xff] }
 0x39f   :  { %v3303_v43 = vsub.f32 %v3139_v20, %v1162_v38  ;;  %v1117_v11 = vpop.xlane.xlu1 %1116  ;;  %1266 = vadd.xlane.f32.xlu0 %v1224_v4  ;;  %v2271_v32 = vpack.c.bf16 %v1551_v34, %v1550_v23 }
 0x3a0   :  { %v1165_v1 = vmul.f32 0.0078125, %v1117_v11  ;;  %v1115_v18 = vpop.xlane.xlu0 %1114  ;;  %v1227_v8 = vmul.f32 %v3300_v41, %v3300_v41 }
 0x3a1   :  { %v1164_v61 = vmul.f32 0.0078125, %v1115_v18  ;;  %v1226_v20 = vmul.f32 %v3303_v43, %v3303_v43  ;;  %2272 = vmatprep.subr.bf16.mxu0 %v2271_v32 }
 0x3a2   :  { %v3316_v62 = vsub.f32 %v3144_v30, %v1165_v1  ;;  %1272 = vadd.xlane.f32.xlu1 %v1227_v8  ;;  %2274 = vmatpush3.bf16.msra.mxu0 %v2271_v32  ;;  %v1553_v30 = vld [vmem:[%s3580_s3 + $0x58] sm:$0xff]  ;;  %v1556_v8 = vld [vmem:[%s3580_s3 + $0x70] sm:$0xff] }
 0x3a3   :  { %v3319_v55 = vsub.f32 %v3147_v19, %v1164_v61  ;;  %v1121_v57 = vpop.xlane.xlu1 %1120  ;;  %1270 = vadd.xlane.f32.xlu0 %v1226_v20  ;;  %v2275_v14 = vpack.c.bf16 %v1553_v30, %v1552_v17 }
 0x3a4   :  { %v1167_v27 = vmul.f32 0.0078125, %v1121_v57  ;;  %v1119_v15 = vpop.xlane.xlu0 %1118  ;;  %v1229_v60 = vmul.f32 %v3316_v62, %v3316_v62 }
 0x3a5   :  { %v1166_v37 = vmul.f32 0.0078125, %v1119_v15  ;;  %v1228_v19 = vmul.f32 %v3319_v55, %v3319_v55  ;;  %2276 = vmatprep.subr.bf16.mxu0 %v2275_v14 }
 0x3a6   :  { %v3332_v10 = vsub.f32 %v3152_v2, %v1167_v27  ;;  %1276 = vadd.xlane.f32.xlu1 %v1229_v60  ;;  %2278 = vmatpush3.bf16.msra.mxu0 %v2275_v14  ;;  %v1555_v2 = vld [vmem:[%s3580_s3 + $0x68] sm:$0xff] }
 0x3a7   :  { %v3335_v21 = vsub.f32 %v3155_v13, %v1166_v37  ;;  %v1125_v47 = vpop.xlane.xlu1 %1124  ;;  %1274 = vadd.xlane.f32.xlu0 %v1228_v19  ;;  %v2279_v16 = vpack.c.bf16 %v1555_v2, %v1554_v42 }
 0x3a8   :  { %v1169_v36 = vmul.f32 0.0078125, %v1125_v47  ;;  %v1123_v51 = vpop.xlane.xlu0 %1122  ;;  %v1231_v54 = vmul.f32 %v3332_v10, %v3332_v10 }
 0x3a9   :  { %v1168_v25 = vmul.f32 0.0078125, %v1123_v51  ;;  %v1230_v13 = vmul.f32 %v3335_v21, %v3335_v21  ;;  %2280 = vmatprep.subr.bf16.mxu0 %v2279_v16 }
 0x3aa   :  { %v3348_v38 = vsub.f32 %v3160_v49, %v1169_v36  ;;  %1280 = vadd.xlane.f32.xlu1 %v1231_v54  ;;  %2282 = vmatpush3.bf16.msra.mxu0 %v2279_v16  ;;  %v1557_v49 = vld [vmem:[%s3580_s3 + $0x78] sm:$0xff] }
 0x3ab   :  { %v3351_v4 = vsub.f32 %v3163_v40, %v1168_v25  ;;  %v1129_v6 = vpop.xlane.xlu1 %1128  ;;  %1278 = vadd.xlane.f32.xlu0 %v1230_v13  ;;  %v2283_v34 = vpack.c.bf16 %v1557_v49, %v1556_v8 }
 0x3ac   :  { %v1171_v11 = vmul.f32 0.0078125, %v1129_v6  ;;  %v1127_v1 = vpop.xlane.xlu0 %1126  ;;  %v1233_v18 = vmul.f32 %v3348_v38, %v3348_v38 }
 0x3ad   :  { %v1170_v23 = vmul.f32 0.0078125, %v1127_v1  ;;  %v1232_v40 = vmul.f32 %v3351_v4, %v3351_v4  ;;  %2284 = vmatprep.subr.bf16.mxu0 %v2283_v34 }
 0x3ae   :  { %v3364_v61 = vsub.f32 %v3168_v50, %v1171_v11  ;;  %1284 = vadd.xlane.f32.xlu1 %v1233_v18  ;;  %2286 = vmatpush3.bf16.msra.mxu0 %v2283_v34 }
 0x3af   :  { %v3367_v20 = vsub.f32 %v3171_v44, %v1170_v23  ;;  %v1133_v32 = vpop.xlane.xlu1 %1132  ;;  %1282 = vadd.xlane.f32.xlu0 %v1232_v40 }
 0x3b0   :  { %v1173_v57 = vmul.f32 0.0078125, %v1133_v32  ;;  %v1131_v27 = vpop.xlane.xlu0 %1130  ;;  %v1235_v15 = vmul.f32 %v3364_v61, %v3364_v61 }
 0x3b1   :  { %v1172_v60 = vmul.f32 0.0078125, %v1131_v27  ;;  %v1234_v17 = vmul.f32 %v3367_v20, %v3367_v20 }
 0x3b2   :  { %v3374_v50 = vsub.f32 %v3176_v59, %v1173_v57  ;;  %1288 = vadd.xlane.f32.xlu1 %v1235_v15 }
 0x3b3   :  { %v3377_v44 = vsub.f32 %v3179_v45, %v1172_v60  ;;  %v1137_v30 = vpop.xlane.xlu1 %1136  ;;  %1286 = vadd.xlane.f32.xlu0 %v1234_v17 }
 0x3b4   :  { %v1175_v37 = vmul.f32 0.0078125, %v1137_v30  ;;  %v1135_v19 = vpop.xlane.xlu0 %1134  ;;  %v1237_v14 = vmul.f32 %v3374_v50, %v3374_v50 }
 0x3b5   :  { %v1174_v47 = vmul.f32 0.0078125, %v1135_v19  ;;  %v1236_v36 = vmul.f32 %v3377_v44, %v3377_v44 }
 0x3b6   :  { %v3384_v51 = vsub.f32 %v3184_v26, %v1175_v37  ;;  %1292 = vadd.xlane.f32.xlu1 %v1237_v14 }
 0x3b7   :  { %v3387_v59 = vsub.f32 %v3187_v7, %v1174_v47  ;;  %v1141_v45 = vpop.xlane.xlu1 %1140  ;;  %1290 = vadd.xlane.f32.xlu0 %v1236_v36 }
 0x3b8   :  { %v1177_v54 = vmul.f32 0.0078125, %v1141_v45  ;;  %v1139_v42 = vpop.xlane.xlu0 %1138  ;;  %v1239_v2 = vmul.f32 %v3384_v51, %v3384_v51 }
 0x3b9   :  { %v1176_v25 = vmul.f32 0.0078125, %v1139_v42  ;;  %v1238_v13 = vmul.f32 %v3387_v59, %v3387_v59 }
 0x3ba   :  { %v3394_v16 = vsub.f32 %v3192_v24, %v1177_v54  ;;  %1296 = vadd.xlane.f32.xlu1 %v1239_v2 }
 0x3bb   :  { %v3397_v26 = vsub.f32 %v3195_v0, %v1176_v25  ;;  %v1145_v7 = vpop.xlane.xlu1 %1144  ;;  %1294 = vadd.xlane.f32.xlu0 %v1238_v13 }
 0x3bc   :  { %v1179_v6 = vmul.f32 0.0078125, %v1145_v7  ;;  %v1143_v11 = vpop.xlane.xlu0 %1142  ;;  %v1241_v1 = vmul.f32 %v3394_v16, %v3394_v16  ;;  %v1440_v7 = vsub.s32 4, %v2621_v39 }
 0x3bd   :  { %v1178_v18 = vmul.f32 0.0078125, %v1143_v11  ;;  %v1240_v8 = vmul.f32 %v3397_v26, %v3397_v26 }
 0x3be   :  { %v3404_v49 = vsub.f32 %v3200_v46, %v1179_v6  ;;  %1300 = vadd.xlane.f32.xlu1 %v1241_v1 }
 0x3bf   :  { %v3407_v24 = vsub.f32 %v3203_v63, %v1178_v18  ;;  %v1149_v0 = vpop.xlane.xlu1 %1148  ;;  %1298 = vadd.xlane.f32.xlu0 %v1240_v8  ;;  %v1476_v18 = vsub.s32 5, %v2621_v39 }
 0x3c0   :  { %v1181_v23 = vmul.f32 0.0078125, %v1149_v0  ;;  %v1147_v40 = vpop.xlane.xlu0 %1146  ;;  %v1243_v34 = vmul.f32 %v3404_v49, %v3404_v49 }
 0x3c1   :  { %v1180_v32 = vmul.f32 0.0078125, %v1147_v40  ;;  %v1242_v57 = vmul.f32 %v3407_v24, %v3407_v24  ;;  %v3426_v40 = vrot.slane %v3082_v33, %v1440_v7 }
 0x3c2   :  { %v3414_v27 = vsub.f32 %v3208_v5, %v1181_v23  ;;  %1304 = vadd.xlane.f32.xlu1 %v1243_v34 }
 0x3c3   :  { %v3417_v46 = vsub.f32 %v3211_v53, %v1180_v32  ;;  %1302 = vadd.xlane.f32.xlu0 %v1242_v57 }
 0x3c4   :  { %v1245_v63 = vmul.f32 %v3414_v27, %v3414_v27 }
 0x3c5   :  { %v1244_v15 = vmul.f32 %v3417_v46, %v3417_v46 }
 0x3c6   :  { %1308 = vadd.xlane.f32.xlu1 %v1245_v63 }
 0x3c7   :  { %1306 = vadd.xlane.f32.xlu0 %v1244_v15 }
 0x417   :  { %v1249_v60 = vpop.xlane.xlu1 %1248 }
 0x418   :  { %v1311_v17 = vmul.f32 0.0078125, %v1249_v60  ;;  %v1247_v30 = vpop.xlane.xlu0 %1246 }
 0x419   :  { %v1310_v37 = vmul.f32 0.0078125, %v1247_v30 }
 0x41a   :  { %v1343_v19 = vadd.f32 1e-05, %v1311_v17  ;;  %v3430_v17 = vrot.slane %v3082_v33, %v1476_v18 }
 0x41b   :  { %v1342_v5 = vadd.f32 1e-05, %v1310_v37  ;;  %v1253_v14 = vpop.xlane.xlu1 %1252 }
 0x41c   :  { %2358 = vrsqrt.f32 %v1343_v19  ;;  %v1313_v47 = vmul.f32 0.0078125, %v1253_v14  ;;  %v1251_v53 = vpop.xlane.xlu0 %1250 }
 0x41d   :  { %2360 = vrsqrt.f32 %v1342_v5  ;;  %v1312_v36 = vmul.f32 0.0078125, %v1251_v53 }
 0x41e   :  { %v1345_v45 = vadd.f32 1e-05, %v1313_v47 }
 0x41f   :  { %v1344_v54 = vadd.f32 1e-05, %v1312_v36  ;;  %v1257_v42 = vpop.xlane.xlu1 %1256 }
 0x420   :  { %2362 = vrsqrt.f32 %v1345_v45  ;;  %v1315_v2 = vmul.f32 0.0078125, %v1257_v42  ;;  %v1255_v25 = vpop.xlane.xlu0 %1254 }
 0x421   :  { %2364 = vrsqrt.f32 %v1344_v54  ;;  %v1314_v13 = vmul.f32 0.0078125, %v1255_v25 }
 0x422   :  { %v1347_v6 = vadd.f32 1e-05, %v1315_v2 }
 0x423   :  { %v1346_v11 = vadd.f32 1e-05, %v1314_v13  ;;  %v1261_v1 = vpop.xlane.xlu1 %1260 }
 0x424   :  { %2366 = vrsqrt.f32 %v1347_v6  ;;  %v1317_v8 = vmul.f32 0.0078125, %v1261_v1  ;;  %v1259_v0 = vpop.xlane.xlu0 %1258 }
 0x425   :  { %2368 = vrsqrt.f32 %v1346_v11  ;;  %v1316_v23 = vmul.f32 0.0078125, %v1259_v0 }
 0x426   :  { %v2359_v34 = vpop.eup %2358  ;;  %v1349_v32 = vadd.f32 1e-05, %v1317_v8 }
 0x427   :  { %v2361_v57 = vpop.eup %2360  ;;  %v1407_v63 = vmul.f32 %v2359_v34, %v3228_v58  ;;  %v1348_v15 = vadd.f32 1e-05, %v1316_v23  ;;  %v1265_v60 = vpop.xlane.xlu1 %1264 }
 0x428   :  { %2370 = vrsqrt.f32 %v1349_v32  ;;  %v1319_v30 = vmul.f32 0.0078125, %v1265_v60  ;;  %v1263_v37 = vpop.xlane.xlu0 %1262  ;;  %v1406_v19 = vmul.f32 %v2361_v57, %v3231_v3 }
 0x429   :  { %2372 = vrsqrt.f32 %v1348_v15  ;;  %v1318_v5 = vmul.f32 0.0078125, %v1263_v37  ;;  %v1443_v14 = vmul.f32 %v3426_v40, %v1407_v63 }
 0x42a   :  { %v2363_v47 = vpop.eup %2362  ;;  %v1351_v53 = vadd.f32 1e-05, %v1319_v30  ;;  %v1442_v36 = vmul.f32 %v3426_v40, %v1406_v19 }
 0x42b   :  { %v2365_v45 = vpop.eup %2364  ;;  %v1350_v58 = vadd.f32 1e-05, %v1318_v5  ;;  %v1269_v54 = vpop.xlane.xlu1 %1268  ;;  %v1479_v42 = vadd.f32 %v3430_v17, %v1443_v14  ;;  %v1409_v33 = vmul.f32 %v2363_v47, %v3238_v52 }
 0x42c   :  { %2374 = vrsqrt.f32 %v1351_v53  ;;  %v1321_v2 = vmul.f32 0.0078125, %v1269_v54  ;;  %v1267_v25 = vpop.xlane.xlu0 %1266  ;;  %v1478_v3 = vadd.f32 %v3430_v17, %v1442_v36  ;;  %v1408_v13 = vmul.f32 %v2365_v45, %v3241_v29 }
 0x42d   :  { %2376 = vrsqrt.f32 %v1350_v58  ;;  %v1320_v7 = vmul.f32 0.0078125, %v1267_v25  ;;  %v1445_v6 = vmul.f32 %v3426_v40, %v1409_v33  ;;  %v1511_v52 = vmax.f32 %v1479_v42, 0.0 }
 0x42e   :  { %v2367_v11 = vpop.eup %2366  ;;  %v1353_v1 = vadd.f32 1e-05, %v1321_v2  ;;  %v1510_v18 = vmax.f32 %v1478_v3, 0.0  ;;  %v1444_v8 = vmul.f32 %v3426_v40, %v1408_v13 }
 0x42f   :  { %v2369_v0 = vpop.eup %2368  ;;  %v1352_v23 = vadd.f32 1e-05, %v1320_v7  ;;  %v1273_v34 = vpop.xlane.xlu1 %1272  ;;  %v1481_v32 = vadd.f32 %v3430_v17, %v1445_v6  ;;  %v1411_v57 = vmul.f32 %v2367_v11, %v3248_v22 }
 0x430   :  { %2378 = vrsqrt.f32 %v1353_v1  ;;  %v1323_v63 = vmul.f32 0.0078125, %v1273_v34  ;;  %2167 = vmatprep.mubr.f32.mxu0 %v1510_v18  ;;  %v1271_v29 = vpop.xlane.xlu0 %1270  ;;  %v1480_v15 = vadd.f32 %v3430_v17, %v1444_v8  ;;  %v1410_v60 = vmul.f32 %v2369_v0, %v3251_v9 }
 0x431   :  { %2380 = vrsqrt.f32 %v1352_v23  ;;  %v1322_v30 = vmul.f32 0.0078125, %v1271_v29  ;;  %2168 = vmatmul.mubr.f32.vlgmr.msra.gmra.mrb[16].mxu0 %v1511_v52  ;;  %v1447_v37 = vmul.f32 %v3426_v40, %v1411_v57  ;;  %v1513_v45 = vmax.f32 %v1481_v32, 0.0 }
 0x432   :  { %v2371_v19 = vpop.eup %2370  ;;  %v1355_v5 = vadd.f32 1e-05, %v1323_v63  ;;  %v1512_v14 = vmax.f32 %v1480_v15, 0.0  ;;  %v1446_v47 = vmul.f32 %v3426_v40, %v1410_v60 }
 0x433   :  { %v2373_v53 = vpop.eup %2372  ;;  %v1354_v22 = vadd.f32 1e-05, %v1322_v30  ;;  %v1277_v36 = vpop.xlane.xlu1 %1276  ;;  %v1483_v58 = vadd.f32 %v3430_v17, %v1447_v37  ;;  %v1413_v54 = vmul.f32 %v2371_v19, %v3258_v56 }
 0x434   :  { %2382 = vrsqrt.f32 %v1355_v5  ;;  %v1325_v9 = vmul.f32 0.0078125, %v1277_v36  ;;  %2170 = vmatprep.mubr.f32.mxu0 %v1512_v14  ;;  %v1275_v42 = vpop.xlane.xlu0 %1274  ;;  %v1482_v33 = vadd.f32 %v3430_v17, %v1446_v47  ;;  %v1412_v2 = vmul.f32 %v2373_v53, %v3261_v28 }
 0x435   :  { %2384 = vrsqrt.f32 %v1354_v22  ;;  %v1324_v25 = vmul.f32 0.0078125, %v1275_v42  ;;  %2171 = vmatmul.mubr.f32.gmra.mrb[18].mxu0 %v1513_v45  ;;  %v1449_v3 = vmul.f32 %v3426_v40, %v1413_v54  ;;  %v1515_v8 = vmax.f32 %v1483_v58, 0.0 }
 0x436   :  { %v2375_v13 = vpop.eup %2374  ;;  %v1357_v7 = vadd.f32 1e-05, %v1325_v9  ;;  %v1514_v6 = vmax.f32 %v1482_v33, 0.0  ;;  %v1448_v11 = vmul.f32 %v3426_v40, %v1412_v2 }
 0x437   :  { %v2377_v1 = vpop.eup %2376  ;;  %v1356_v56 = vadd.f32 1e-05, %v1324_v25  ;;  %v1281_v18 = vpop.xlane.xlu1 %1280  ;;  %v1485_v0 = vadd.f32 %v3430_v17, %v1449_v3  ;;  %v1415_v23 = vmul.f32 %v2375_v13, %v3268_v35 }
 0x438   :  { %2386 = vrsqrt.f32 %v1357_v7  ;;  %v1327_v28 = vmul.f32 0.0078125, %v1281_v18  ;;  %2173 = vmatprep.mubr.f32.mxu0 %v1514_v6  ;;  %v1279_v34 = vpop.xlane.xlu0 %1278  ;;  %v1484_v52 = vadd.f32 %v3430_v17, %v1448_v11  ;;  %v1414_v32 = vmul.f32 %v2377_v1, %v3271_v31 }
 0x439   :  { %2388 = vrsqrt.f32 %v1356_v56  ;;  %v1326_v57 = vmul.f32 0.0078125, %v1279_v34  ;;  %2174 = vmatmul.mubr.f32.gmra.mrb[20].mxu0 %v1515_v8  ;;  %v1451_v63 = vmul.f32 %v3426_v40, %v1415_v23  ;;  %v1517_v5 = vmax.f32 %v1485_v0, 0.0 }
 0x43a   :  { %v2379_v29 = vpop.eup %2378  ;;  %v1359_v15 = vadd.f32 1e-05, %v1327_v28  ;;  %v1516_v60 = vmax.f32 %v1484_v52, 0.0  ;;  %v1450_v30 = vmul.f32 %v3426_v40, %v1414_v32 }
 0x43b   :  { %v2381_v37 = vpop.eup %2380  ;;  %v1358_v35 = vadd.f32 1e-05, %v1326_v57  ;;  %v1285_v19 = vpop.xlane.xlu1 %1284  ;;  %v1487_v14 = vadd.f32 %v3430_v17, %v1451_v63  ;;  %v1417_v47 = vmul.f32 %v2379_v29, %v3284_v48 }
 0x43c   :  { %2390 = vrsqrt.f32 %v1359_v15  ;;  %v1329_v31 = vmul.f32 0.0078125, %v1285_v19  ;;  %2176 = vmatprep.mubr.f32.mxu0 %v1516_v60  ;;  %v1283_v53 = vpop.xlane.xlu0 %1282  ;;  %v1486_v22 = vadd.f32 %v3430_v17, %v1450_v30  ;;  %v1416_v36 = vmul.f32 %v2381_v37, %v3287_v12 }
 0x43d   :  { %2392 = vrsqrt.f32 %v1358_v35  ;;  %v1328_v45 = vmul.f32 0.0078125, %v1283_v53  ;;  %2177 = vmatmul.mubr.f32.gmra.mrb[22].mxu0 %v1517_v5  ;;  %v1453_v58 = vmul.f32 %v3426_v40, %v1417_v47  ;;  %v1519_v3 = vmax.f32 %v1487_v14, 0.0 }
 0x43e   :  { %v2383_v54 = vpop.eup %2382  ;;  %v1361_v9 = vadd.f32 1e-05, %v1329_v31  ;;  %v1518_v42 = vmax.f32 %v1486_v22, 0.0  ;;  %v1452_v33 = vmul.f32 %v3426_v40, %v1416_v36 }
 0x43f   :  { %v2385_v2 = vpop.eup %2384  ;;  %v1360_v48 = vadd.f32 1e-05, %v1328_v45  ;;  %v1289_v25 = vpop.xlane.xlu1 %1288  ;;  %v1489_v13 = vadd.f32 %v3430_v17, %v1453_v58  ;;  %v1419_v7 = vmul.f32 %v2383_v54, %v3300_v41 }
 0x440   :  { %2394 = vrsqrt.f32 %v1361_v9  ;;  %v1331_v12 = vmul.f32 0.0078125, %v1289_v25  ;;  %2179 = vmatprep.mubr.f32.mxu0 %v1518_v42  ;;  %v1287_v6 = vpop.xlane.xlu0 %1286  ;;  %v1488_v11 = vadd.f32 %v3430_v17, %v1452_v33  ;;  %v1418_v1 = vmul.f32 %v2385_v2, %v3303_v43 }
 0x441   :  { %2396 = vrsqrt.f32 %v1360_v48  ;;  %v1330_v56 = vmul.f32 0.0078125, %v1287_v6  ;;  %2180 = vmatmul.mubr.f32.gmra.mrb[24].mxu0 %v1519_v3  ;;  %v1455_v18 = vmul.f32 %v3426_v40, %v1419_v7  ;;  %v1521_v32 = vmax.f32 %v1489_v13, 0.0 }
 0x442   :  { %v2387_v8 = vpop.eup %2386  ;;  %v1363_v0 = vadd.f32 1e-05, %v1331_v12  ;;  %v1520_v23 = vmax.f32 %v1488_v11, 0.0  ;;  %v1454_v28 = vmul.f32 %v3426_v40, %v1418_v1 }
 0x443   :  { %v2389_v34 = vpop.eup %2388  ;;  %v1362_v41 = vadd.f32 1e-05, %v1330_v56  ;;  %v1293_v52 = vpop.xlane.xlu1 %1292  ;;  %v1491_v57 = vadd.f32 %v3430_v17, %v1455_v18  ;;  %v1421_v63 = vmul.f32 %v2387_v8, %v3316_v62 }
 0x444   :  { %2398 = vrsqrt.f32 %v1363_v0  ;;  %v1333_v43 = vmul.f32 0.0078125, %v1293_v52  ;;  %2182 = vmatprep.mubr.f32.mxu0 %v1520_v23  ;;  %v1291_v29 = vpop.xlane.xlu0 %1290  ;;  %v1490_v15 = vadd.f32 %v3430_v17, %v1454_v28  ;;  %v1420_v60 = vmul.f32 %v2389_v34, %v3319_v55 }
 0x445   :  { %2400 = vrsqrt.f32 %v1362_v41  ;;  %v1332_v30 = vmul.f32 0.0078125, %v1291_v29  ;;  %2183 = vmatmul.mubr.f32.gmra.mrb[26].mxu0 %v1521_v32  ;;  %v1457_v37 = vmul.f32 %v3426_v40, %v1421_v63  ;;  %v1523_v53 = vmax.f32 %v1491_v57, 0.0 }
 0x446   :  { %v2391_v35 = vpop.eup %2390  ;;  %v1365_v19 = vadd.f32 1e-05, %v1333_v43  ;;  %v1522_v5 = vmax.f32 %v1490_v15, 0.0  ;;  %v1456_v14 = vmul.f32 %v3426_v40, %v1420_v60 }
 0x447   :  { %v2393_v47 = vpop.eup %2392  ;;  %v1364_v62 = vadd.f32 1e-05, %v1332_v30  ;;  %v1297_v31 = vpop.xlane.xlu1 %1296  ;;  %v1493_v22 = vadd.f32 %v3430_v17, %v1457_v37  ;;  %v1423_v36 = vmul.f32 %v2391_v35, %v3332_v10 }
 0x448   :  { %2402 = vrsqrt.f32 %v1365_v19  ;;  %v1335_v55 = vmul.f32 0.0078125, %v1297_v31  ;;  %2185 = vmatprep.mubr.f32.mxu0 %v1522_v5  ;;  %v1295_v45 = vpop.xlane.xlu0 %1294  ;;  %v1492_v58 = vadd.f32 %v3430_v17, %v1456_v14  ;;  %v1422_v54 = vmul.f32 %v2393_v47, %v3335_v21 }
 0x449   :  { %2404 = vrsqrt.f32 %v1364_v62  ;;  %v1334_v9 = vmul.f32 0.0078125, %v1295_v45  ;;  %2186 = vmatmul.mubr.f32.gmra.mrb[28].mxu0 %v1523_v53  ;;  %v1459_v42 = vmul.f32 %v3426_v40, %v1423_v36  ;;  %v1525_v7 = vmax.f32 %v1493_v22, 0.0 }
 0x44a   :  { %v2395_v33 = vpop.eup %2394  ;;  %v1367_v2 = vadd.f32 1e-05, %v1335_v55  ;;  %v1524_v48 = vmax.f32 %v1492_v58, 0.0  ;;  %v1458_v25 = vmul.f32 %v3426_v40, %v1422_v54 }
 0x44b   :  { %v2397_v3 = vpop.eup %2396  ;;  %v1366_v10 = vadd.f32 1e-05, %v1334_v9  ;;  %v1301_v13 = vpop.xlane.xlu1 %1300  ;;  %v1495_v12 = vadd.f32 %v3430_v17, %v1459_v42  ;;  %v1425_v6 = vmul.f32 %v2395_v33, %v3348_v38 }
 0x44c   :  { %2406 = vrsqrt.f32 %v1367_v2  ;;  %v1337_v21 = vmul.f32 0.0078125, %v1301_v13  ;;  %2188 = vmatprep.mubr.f32.mxu0 %v1524_v48  ;;  %v1299_v11 = vpop.xlane.xlu0 %1298  ;;  %v1494_v1 = vadd.f32 %v3430_v17, %v1458_v25  ;;  %v1424_v56 = vmul.f32 %v2397_v3, %v3351_v4 }
 0x44d   :  { %2408 = vrsqrt.f32 %v1366_v10  ;;  %v1336_v18 = vmul.f32 0.0078125, %v1299_v11  ;;  %2189 = vmatmul.mubr.f32.gmra.mrb[30].mxu0 %v1525_v7  ;;  %v1461_v8 = vmul.f32 %v3426_v40, %v1425_v6  ;;  %v1527_v32 = vmax.f32 %v1495_v12, 0.0 }
 0x44e   :  { %v2399_v0 = vpop.eup %2398  ;;  %v1369_v23 = vadd.f32 1e-05, %v1337_v21  ;;  %v1526_v28 = vmax.f32 %v1494_v1, 0.0  ;;  %v1460_v34 = vmul.f32 %v3426_v40, %v1424_v56 }
 0x44f   :  { %v2401_v41 = vpop.eup %2400  ;;  %v1368_v38 = vadd.f32 1e-05, %v1336_v18  ;;  %v1305_v52 = vpop.xlane.xlu1 %1304  ;;  %v1497_v57 = vadd.f32 %v3430_v17, %v1461_v8  ;;  %v1427_v63 = vmul.f32 %v2399_v0, %v3364_v61 }
 0x450   :  { %2410 = vrsqrt.f32 %v1369_v23  ;;  %v1339_v4 = vmul.f32 0.0078125, %v1305_v52  ;;  %2191 = vmatprep.mubr.f32.mxu0 %v1526_v28  ;;  %v1303_v43 = vpop.xlane.xlu0 %1302  ;;  %v1496_v29 = vadd.f32 %v3430_v17, %v1460_v34  ;;  %v1426_v15 = vmul.f32 %v2401_v41, %v3367_v20 }
 0x451   :  { %2412 = vrsqrt.f32 %v1368_v38  ;;  %v1338_v60 = vmul.f32 0.0078125, %v1303_v43  ;;  %2192 = vmatmul.mubr.f32.gmra.mrb[32].mxu0 %v1527_v32  ;;  %v1463_v30 = vmul.f32 %v3426_v40, %v1427_v63  ;;  %v1529_v62 = vmax.f32 %v1497_v57, 0.0 }
 0x452   :  { %v2403_v37 = vpop.eup %2402  ;;  %v1371_v35 = vadd.f32 1e-05, %v1339_v4  ;;  %v1528_v19 = vmax.f32 %v1496_v29, 0.0  ;;  %v1462_v5 = vmul.f32 %v3426_v40, %v1426_v15 }
 0x453   :  { %v2405_v14 = vpop.eup %2404  ;;  %v1370_v61 = vadd.f32 1e-05, %v1338_v60  ;;  %v1309_v47 = vpop.xlane.xlu1 %1308  ;;  %v1499_v31 = vadd.f32 %v3430_v17, %v1463_v30  ;;  %v1429_v53 = vmul.f32 %v2403_v37, %v3374_v50 }
 0x454   :  { %2414 = vrsqrt.f32 %v1371_v35  ;;  %v1341_v20 = vmul.f32 0.0078125, %v1309_v47  ;;  %2194 = vmatprep.mubr.f32.mxu0 %v1528_v19  ;;  %v1307_v22 = vpop.xlane.xlu0 %1306  ;;  %v1498_v36 = vadd.f32 %v3430_v17, %v1462_v5  ;;  %v1428_v55 = vmul.f32 %v2405_v14, %v3377_v44 }
 0x455   :  { %2416 = vrsqrt.f32 %v1370_v61  ;;  %v1340_v45 = vmul.f32 0.0078125, %v1307_v22  ;;  %2195 = vmatmul.mubr.f32.gmra.mrb[34].mxu0 %v1529_v62  ;;  %v1465_v58 = vmul.f32 %v3426_v40, %v1429_v53  ;;  %v1531_v48 = vmax.f32 %v1499_v31, 0.0 }
 0x456   :  { %v2407_v54 = vpop.eup %2406  ;;  %v1373_v9 = vadd.f32 1e-05, %v1341_v20  ;;  %v1530_v42 = vmax.f32 %v1498_v36, 0.0  ;;  %v1464_v33 = vmul.f32 %v3426_v40, %v1428_v55  ;;  %v1560_v61 = vsub.s32 6, %v2621_v39 }
 0x457   :  { %v2409_v2 = vpop.eup %2408  ;;  %v1372_v50 = vadd.f32 1e-05, %v1340_v45  ;;  %v1501_v25 = vadd.f32 %v3430_v17, %v1465_v58  ;;  %v1431_v3 = vmul.f32 %v2407_v54, %v3384_v51 }
 0x458   :  { %2418 = vrsqrt.f32 %v1373_v9  ;;  %2197 = vmatprep.mubr.f32.mxu0 %v1530_v42  ;;  %v1500_v44 = vadd.f32 %v3430_v17, %v1464_v33  ;;  %v1430_v10 = vmul.f32 %v2409_v2, %v3387_v59 }
 0x459   :  { %2420 = vrsqrt.f32 %v1372_v50  ;;  %2198 = vmatmul.mubr.f32.gmra.mrb[36].mxu0 %v1531_v48  ;;  %v1467_v13 = vmul.f32 %v3426_v40, %v1431_v3  ;;  %v1533_v11 = vmax.f32 %v1501_v25, 0.0 }
 0x45a   :  { %v2411_v7 = vpop.eup %2410  ;;  %v1532_v12 = vmax.f32 %v1500_v44, 0.0  ;;  %v1466_v6 = vmul.f32 %v3426_v40, %v1430_v10 }
 0x45b   :  { %v2413_v21 = vpop.eup %2412  ;;  %v1503_v1 = vadd.f32 %v3430_v17, %v1467_v13  ;;  %v1433_v51 = vmul.f32 %v2411_v7, %v3394_v16 }
 0x45c   :  { %2200 = vmatprep.mubr.f32.mxu0 %v1532_v12  ;;  %v1502_v56 = vadd.f32 %v3430_v17, %v1466_v6  ;;  %v1432_v18 = vmul.f32 %v2413_v21, %v3397_v26 }
 0x45d   :  { %2201 = vmatmul.mubr.f32.gmra.mrb[38].mxu0 %v1533_v11  ;;  %v1469_v59 = vmul.f32 %v3426_v40, %v1433_v51  ;;  %v1535_v34 = vmax.f32 %v1503_v1, 0.0 }
 0x45e   :  { %v2415_v8 = vpop.eup %2414  ;;  %v1534_v0 = vmax.f32 %v1502_v56, 0.0  ;;  %v1468_v23 = vmul.f32 %v3426_v40, %v1432_v18 }
 0x45f   :  { %v2417_v28 = vpop.eup %2416  ;;  %v1505_v41 = vadd.f32 %v3430_v17, %v1469_v59  ;;  %v1435_v38 = vmul.f32 %v2415_v8, %v3404_v49 }
 0x460   :  { %2203 = vmatprep.mubr.f32.mxu0 %v1534_v0  ;;  %v1504_v16 = vadd.f32 %v3430_v17, %v1468_v23  ;;  %v1434_v52 = vmul.f32 %v2417_v28, %v3407_v24 }
 0x461   :  { %2204 = vmatmul.mubr.f32.gmra.mrb[40].mxu0 %v1535_v34  ;;  %v1471_v26 = vmul.f32 %v3426_v40, %v1435_v38  ;;  %v1537_v43 = vmax.f32 %v1505_v41, 0.0 }
 0x462   :  { %v2419_v32 = vpop.eup %2418  ;;  %v1536_v57 = vmax.f32 %v1504_v16, 0.0  ;;  %v1470_v63 = vmul.f32 %v3426_v40, %v1434_v52 }
 0x463   :  { %v2421_v4 = vpop.eup %2420  ;;  %v1507_v29 = vadd.f32 %v3430_v17, %v1471_v26  ;;  %v1437_v15 = vmul.f32 %v2419_v32, %v3414_v27 }
 0x464   :  { %2206 = vmatprep.mubr.f32.mxu0 %v1536_v57  ;;  %v1506_v49 = vadd.f32 %v3430_v17, %v1470_v63  ;;  %v1436_v60 = vmul.f32 %v2421_v4, %v3417_v46  ;;  %v2423_v46 = vld [vmem:[%s3581_s4] sm:$0xff]  ;;  %s2448_s4 = smov [#allocation2]  }
 0x465   :  { %2207 = vmatmul.mubr.f32.gmra.mrb[42].mxu0 %v1537_v43  ;;  %v1473_v24 = vmul.f32 %v3426_v40, %v1437_v15  ;;  %v1539_v35 = vmax.f32 %v1507_v29, 0.0  ;;  %v3531_v47 = vrot.slane %v2423_v46, %v1560_v61  ;;  %s1824_s24 = sshll.u32 %s2448_s4, 4  ;;  %s1825_s24 = int_to_ptr.vmem [resolvable:$true] %s1824_s24 }
 0x466   :  { %v1538_v30 = vmax.f32 %v1506_v49, 0.0  ;;  %v1472_v37 = vmul.f32 %v3426_v40, %v1436_v60  ;;  %s2424_s25 = scalar_lea.vmem %s1825_s24, 4096  ;;  %p2429_p1 = scmp.lt.s32.totalorder %s1825_s24, %s1825_s24 }
 0x467   :  { %v1509_v19 = vadd.f32 %v3430_v17, %v1473_v24  ;;  %p2425_p0 = scmp.ne.s32.totalorder %s1825_s24, %s2424_s25  ;;  %p2430_p2 = scmp.lt.s32.totalorder %s2424_s25, %s2424_s25 }
 0x468   :  { %2209 = vmatprep.mubr.f32.mxu0 %v1538_v30  ;;  %v1508_v5 = vadd.f32 %v3430_v17, %v1472_v37 }
 0x469   :  { %2210 = vmatmul.mubr.f32.gmra.mrb[44].mxu0 %v1539_v35  ;;  %v1541_v27 = vmax.f32 %v1509_v19, 0.0  ;;  %p2431_p3 = por %p2430_p2, %p2429_p1 }
 0x46a   :  { %v1540_v14 = vmax.f32 %v1508_v5, 0.0 }
 0x46b   :  { %p2432_p4 = pnand %p2431_p3, %p2425_p0 }
 0x46c   :  { %2212 = vmatprep.mubr.f32.mxu0 %v1540_v14 }
 0x46d   :  { %2213 = vmatmul.mubr.f32.gmra.mrb[46].mxu0 %v1541_v27 }
 0x504   :  { %v2169_v40 = vpop.f32.mrb[16].mxu0 }
 0x505   :  { %v1634_v62 = vadd.f32 %v2169_v40, %v3531_v47  ;;  %v1628_v31 = vpop.f32.mrb[17].mxu0 }
 0x506   :  { %v1629_v53 = vadd.f32 %v1628_v31, %v3531_v47 }
 0x507   :  { %1788 = vst [vmem:[#allocation2 + $0x8] sm:$0xff] %v1634_v62 }
 0x508   :  { %1787 = vst [vmem:[#allocation2] sm:$0xff] %v1629_v53  ;;  %v2172_v17 = vpop.f32.mrb[18].mxu0 }
 0x509   :  { %v1644_v20 = vadd.f32 %v2172_v17, %v3531_v47  ;;  %v1638_v22 = vpop.f32.mrb[19].mxu0 }
 0x50a   :  { %v1639_v39 = vadd.f32 %v1638_v22, %v3531_v47 }
 0x50b   :  { %1790 = vst [vmem:[#allocation2 + $0x18] sm:$0xff] %v1644_v20 }
 0x50c   :  { %1789 = vst [vmem:[#allocation2 + $0x10] sm:$0xff] %v1639_v39  ;;  %v2175_v36 = vpop.f32.mrb[20].mxu0 }
 0x50d   :  { %v1654_v55 = vadd.f32 %v2175_v36, %v3531_v47  ;;  %v1648_v45 = vpop.f32.mrb[21].mxu0 }
 0x50e   :  { %v1649_v58 = vadd.f32 %v1648_v45, %v3531_v47 }
 0x50f   :  { %1792 = vst [vmem:[#allocation2 + $0x28] sm:$0xff] %v1654_v55 }
 0x510   :  { %1791 = vst [vmem:[#allocation2 + $0x20] sm:$0xff] %v1649_v58  ;;  %v2178_v54 = vpop.f32.mrb[22].mxu0 }
 0x511   :  { %v1664_v9 = vadd.f32 %v2178_v54, %v3531_v47  ;;  %v1658_v42 = vpop.f32.mrb[23].mxu0 }
 0x512   :  { %v1659_v33 = vadd.f32 %v1658_v42, %v3531_v47 }
 0x513   :  { %1794 = vst [vmem:[#allocation2 + $0x38] sm:$0xff] %v1664_v9 }
 0x514   :  { %1793 = vst [vmem:[#allocation2 + $0x30] sm:$0xff] %v1659_v33  ;;  %v2181_v2 = vpop.f32.mrb[24].mxu0 }
 0x515   :  { %v1674_v50 = vadd.f32 %v2181_v2, %v3531_v47  ;;  %v1668_v48 = vpop.f32.mrb[25].mxu0 }
 0x516   :  { %v1669_v25 = vadd.f32 %v1668_v48, %v3531_v47 }
 0x517   :  { %1796 = vst [vmem:[#allocation2 + $0x48] sm:$0xff] %v1674_v50 }
 0x518   :  { %1795 = vst [vmem:[#allocation2 + $0x40] sm:$0xff] %v1669_v25  ;;  %v2184_v3 = vpop.f32.mrb[26].mxu0 }
 0x519   :  { %v1684_v44 = vadd.f32 %v2184_v3, %v3531_v47  ;;  %v1678_v10 = vpop.f32.mrb[27].mxu0 }
 0x51a   :  { %v1679_v13 = vadd.f32 %v1678_v10, %v3531_v47 }
 0x51b   :  { %1798 = vst [vmem:[#allocation2 + $0x58] sm:$0xff] %v1684_v44 }
 0x51c   :  { %1797 = vst [vmem:[#allocation2 + $0x50] sm:$0xff] %v1679_v13  ;;  %v2187_v7 = vpop.f32.mrb[28].mxu0 }
 0x51d   :  { %v1694_v12 = vadd.f32 %v2187_v7, %v3531_v47  ;;  %v1688_v6 = vpop.f32.mrb[29].mxu0 }
 0x51e   :  { %v1689_v21 = vadd.f32 %v1688_v6, %v3531_v47 }
 0x51f   :  { %1800 = vst [vmem:[#allocation2 + $0x68] sm:$0xff] %v1694_v12 }
 0x520   :  { %1799 = vst [vmem:[#allocation2 + $0x60] sm:$0xff] %v1689_v21  ;;  %v2190_v11 = vpop.f32.mrb[30].mxu0 }
 0x521   :  { %v1704_v1 = vadd.f32 %v2190_v11, %v3531_v47  ;;  %v1698_v51 = vpop.f32.mrb[31].mxu0 }
 0x522   :  { %v1699_v56 = vadd.f32 %v1698_v51, %v3531_v47 }
 0x523   :  { %1802 = vst [vmem:[#allocation2 + $0x78] sm:$0xff] %v1704_v1 }
 0x524   :  { %1801 = vst [vmem:[#allocation2 + $0x70] sm:$0xff] %v1699_v56  ;;  %v2193_v18 = vpop.f32.mrb[32].mxu0 }
 0x525   :  { %v1714_v59 = vadd.f32 %v2193_v18, %v3531_v47  ;;  %v1708_v8 = vpop.f32.mrb[33].mxu0 }
 0x526   :  { %v1709_v0 = vadd.f32 %v1708_v8, %v3531_v47 }
 0x527   :  { %1804 = vst [vmem:[#allocation2 + $0x88] sm:$0xff] %v1714_v59 }
 0x528   :  { %1803 = vst [vmem:[#allocation2 + $0x80] sm:$0xff] %v1709_v0  ;;  %v2196_v23 = vpop.f32.mrb[34].mxu0 }
 0x529   :  { %v1724_v28 = vadd.f32 %v2196_v23, %v3531_v47  ;;  %v1718_v34 = vpop.f32.mrb[35].mxu0 }
 0x52a   :  { %v1719_v41 = vadd.f32 %v1718_v34, %v3531_v47 }
 0x52b   :  { %1806 = vst [vmem:[#allocation2 + $0x98] sm:$0xff] %v1724_v28 }
 0x52c   :  { %1805 = vst [vmem:[#allocation2 + $0x90] sm:$0xff] %v1719_v41  ;;  %v2199_v38 = vpop.f32.mrb[36].mxu0 }
 0x52d   :  { %v1734_v16 = vadd.f32 %v2199_v38, %v3531_v47  ;;  %v1728_v52 = vpop.f32.mrb[37].mxu0 }
 0x52e   :  { %v1729_v26 = vadd.f32 %v1728_v52, %v3531_v47 }
 0x52f   :  { %1808 = vst [vmem:[#allocation2 + $0xa8] sm:$0xff] %v1734_v16 }
 0x530   :  { %1807 = vst [vmem:[#allocation2 + $0xa0] sm:$0xff] %v1729_v26  ;;  %v2202_v32 = vpop.f32.mrb[38].mxu0 }
 0x531   :  { %v1744_v57 = vadd.f32 %v2202_v32, %v3531_v47  ;;  %v1738_v63 = vpop.f32.mrb[39].mxu0 }
 0x532   :  { %v1739_v4 = vadd.f32 %v1738_v63, %v3531_v47 }
 0x533   :  { %1810 = vst [vmem:[#allocation2 + $0xb8] sm:$0xff] %v1744_v57 }
 0x534   :  { %1809 = vst [vmem:[#allocation2 + $0xb0] sm:$0xff] %v1739_v4  ;;  %v2205_v43 = vpop.f32.mrb[40].mxu0 }
 0x535   :  { %v1754_v29 = vadd.f32 %v2205_v43, %v3531_v47  ;;  %v1748_v15 = vpop.f32.mrb[41].mxu0 }
 0x536   :  { %v1749_v49 = vadd.f32 %v1748_v15, %v3531_v47 }
 0x537   :  { %1812 = vst [vmem:[#allocation2 + $0xc8] sm:$0xff] %v1754_v29 }
 0x538   :  { %1811 = vst [vmem:[#allocation2 + $0xc0] sm:$0xff] %v1749_v49  ;;  %v2208_v60 = vpop.f32.mrb[42].mxu0 }
 0x539   :  { %v1764_v24 = vadd.f32 %v2208_v60, %v3531_v47  ;;  %v1758_v30 = vpop.f32.mrb[43].mxu0 }
 0x53a   :  { %v1759_v37 = vadd.f32 %v1758_v30, %v3531_v47 }
 0x53b   :  { %1814 = vst [vmem:[#allocation2 + $0xd8] sm:$0xff] %v1764_v24 }
 0x53c   :  { %1813 = vst [vmem:[#allocation2 + $0xd0] sm:$0xff] %v1759_v37  ;;  %v2211_v35 = vpop.f32.mrb[44].mxu0 }
 0x53d   :  { %v1774_v19 = vadd.f32 %v2211_v35, %v3531_v47  ;;  %v1768_v5 = vpop.f32.mrb[45].mxu0 }
 0x53e   :  { %v1769_v14 = vadd.f32 %v1768_v5, %v3531_v47 }
 0x53f   :  { %1816 = vst [vmem:[#allocation2 + $0xe8] sm:$0xff] %v1774_v19 }
 0x540   :  { %1815 = vst [vmem:[#allocation2 + $0xe0] sm:$0xff] %v1769_v14  ;;  %v2214_v27 = vpop.f32.mrb[46].mxu0 }
 0x541   :  { %v1784_v61 = vadd.f32 %v2214_v27, %v3531_v47  ;;  %v1778_v46 = vpop.f32.mrb[47].mxu0 }
 0x542   :  { %v1779_v40 = vadd.f32 %v1778_v46, %v3531_v47 }
 0x543   :  { %1818 = vst [vmem:[#allocation2 + $0xf8] sm:$0xff] %v1784_v61 }
 0x544   :  { %1817 = vst [vmem:[#allocation2 + $0xf0] sm:$0xff] %v1779_v40 }
 0x545   :  { %2435 = shalt.err (!%p2432_p4)
}
 0x546   :  { %s2436_s28 = scalar_lea.hbm %s3582_s5, 4096 }
 0x547   :  { %p2437_p5 = scmp.ne.s32.totalorder %s3582_s5, %s2436_s28  ;;  %p2440_p6 = scmp.lt.u32.totalorder %s2436_s28, %s3582_s5 }
 0x549   :  { %p2442_p7 = pnand %p2440_p6, %p2437_p5 }
 0x54b   :  { %2445 = shalt.err (!%p2442_p7)
}
 0x54c   :  { %s2449_s7 = smov 128   ;;  %s2450_s8 = smov 8  }
 0x54d   :  { %1830 = dma.vmem_to_hbm [thread:$0]  %s1825_s24, 4096, %s3582_s5, [#allocation3], %s2449_s7, %s2449_s7, %s2450_s8  }
 0x54e   :  { %2446 = dma.done.wait [#allocation3], 4096  }
 0x54f   :  { %2447 = vsyncadd [#allocation3], 4294963200 }
 0x550   :  { %1834 = vsyncpa [#allocation3], 1 }

</bundles_post_ra>
